<compile_context>
chip_gen: v5e
topology: v5e:2x2
jax: 0.10.0
libtpu: 0.0.40
codegen_flags: <defaults>
</compile_context>

<pallas_src>
import math

import jax
import jax.numpy as jnp
from jax import lax
from jax.experimental import pallas as pl
from jax.experimental.pallas import tpu as pltpu

# ----------------------------- small config ---------------------------------
VOCAB = 25          # amino-acid-ish vocabulary
MAX_POS = 16
HIDDEN = 64
N_HEADS = 2
HEAD_DIM = HIDDEN // N_HEADS
INTERMEDIATE = 128
N_LAYERS = 2
N_CLASSES = 5
CLS_PAD = 128       # lane-dense padded classifier width
DROPOUT_P = 0.35
LN_EPS = 1e-12


# ------------------------------ kernel helpers -------------------------------
def _layernorm(x, g, b):
    mu = jnp.mean(x, axis=-1, keepdims=True)
    var = jnp.mean(jnp.square(x - mu), axis=-1, keepdims=True)
    return (x - mu) * lax.rsqrt(var + LN_EPS) * g + b


def _bf16(x):
    return x.astype(jnp.bfloat16)


# ------------------------- fused per-sequence kernel --------------------------
def fused_forward_kernel(e_ref, mask_ref, drop_ref, eln_ref,
                         wqkv_ref, wo_ref, w1_ref, w2_ref,
                         bqkv_ref, bff1_ref, hv_ref,
                         clsw_ref, clsb_ref, o_ref):
    # ---- embedding LayerNorm for this sequence ------------------------------
    x = _layernorm(e_ref[...], eln_ref[0:1, :], eln_ref[1:2, :])     # (S, H) f32

    # additive key bias built in-kernel from the padding mask: (1, S)
    bias = (1.0 - mask_ref[...]) * -10000.0

    # ---- transformer layers (statically unrolled, weights resident in VMEM) -
    for l in range(N_LAYERS):
        wqkv = wqkv_ref[l]            # (H, 3H)  bf16  (Q columns pre-scaled)
        wo = wo_ref[l]                # (H, H)   bf16
        w1 = w1_ref[l]                # (H, I)   bf16
        w2 = w2_ref[l]                # (I, H)   bf16
        bqkv = bqkv_ref[l]            # (1, 3H)  f32
        bff1 = bff1_ref[l]            # (1, I)   f32
        hv = hv_ref[l]                # (6, H)   f32
        b_o, ln1_g, ln1_b = hv[0:1, :], hv[1:2, :], hv[2:3, :]
        b_ff2, ln2_g, ln2_b = hv[3:4, :], hv[4:5, :], hv[5:6, :]

        # fused QKV projection for this sequence: (S, H) @ (H, 3H)
        qkv = jnp.dot(_bf16(x), wqkv,
                      preferred_element_type=jnp.float32) + bqkv

        # per-head masked self-attention over this sequence only
        attn = None
        for hd in range(N_HEADS):
            lo = hd * HEAD_DIM
            qh = qkv[:, lo:lo + HEAD_DIM]                       # scale folded in
            kh = qkv[:, HIDDEN + lo:HIDDEN + lo + HEAD_DIM]
            vh = qkv[:, 2 * HIDDEN + lo:2 * HIDDEN + lo + HEAD_DIM]

            s = lax.dot_general(_bf16(qh), _bf16(kh),
                                (((1,), (1,)), ((), ())),
                                preferred_element_type=jnp.float32)  # (S, S)
            s = s + bias
            s = s - jnp.max(s, axis=-1, keepdims=True)
            p = jnp.exp(s)
            p = p * pl.reciprocal(jnp.sum(p, axis=-1, keepdims=True),
                                  approx=True)

            ctx = jnp.dot(_bf16(p), _bf16(vh),
                          preferred_element_type=jnp.float32)        # (S, HD)
            # fold head back through the matching sublane slice of W_O
            part = jnp.dot(_bf16(ctx), wo[lo:lo + HEAD_DIM, :],
                           preferred_element_type=jnp.float32)
            attn = part if attn is None else attn + part
        attn = attn + b_o

        h1 = _layernorm(x + attn, ln1_g, ln1_b)

        ff = jnp.dot(_bf16(h1), w1, preferred_element_type=jnp.float32) + bff1
        # TODO(synk): HF BERT uses exact (erf) GELU; tanh approximation used here.
        ff = jax.nn.gelu(ff, approximate=True)
        ff = jnp.dot(_bf16(ff), w2, preferred_element_type=jnp.float32) + b_ff2

        x = _layernorm(h1 + ff, ln2_g, ln2_b)

    # ---- CLS pooling (row 0 of this block) + classifier head -----------------
    cls = x[0:1, :]                                    # (1, H)
    h = cls * drop_ref[...]                            # dropout keep/scale mask
    h = jnp.maximum(h, 0.0)                            # ReLU
    logits = jnp.dot(_bf16(h), clsw_ref[...],
                     preferred_element_type=jnp.float32) + clsb_ref[...]  # (1,128)
    m = jnp.max(logits, axis=-1, keepdims=True)        # LogSoftmax(dim=1)
    z = logits - m
    lse = jnp.log(jnp.sum(jnp.exp(z), axis=-1, keepdims=True))
    o_ref[...] = z - lse                               # padded lanes ~ -1e9


# --------------------------- parameter construction --------------------------
def init_params(key):
    def normal(k, shape, scale=0.02):
        return (scale * jax.random.normal(k, shape)).astype(jnp.float32)

    keys = iter(jax.random.split(key, 4 + N_LAYERS * 6))
    params = {
        "word_emb": normal(next(keys), (VOCAB, HIDDEN)),
        "pos_emb": normal(next(keys), (MAX_POS, HIDDEN)),
        "type_emb": normal(next(keys), (2, HIDDEN)),
        # row 0 = gamma, row 1 = beta
        "emb_ln": jnp.concatenate([jnp.ones((1, HIDDEN), jnp.float32),
                                   jnp.zeros((1, HIDDEN), jnp.float32)], axis=0),
    }

    # classifier weights padded to a lane-dense 128-wide block; padded bias
    # lanes carry -1e9 so LogSoftmax ignores them.
    cls_w = normal(next(keys), (HIDDEN, N_CLASSES))
    cls_w_pad = jnp.zeros((HIDDEN, CLS_PAD), jnp.float32).at[:, :N_CLASSES].set(cls_w)
    params["cls_w"] = cls_w_pad.astype(jnp.bfloat16)
    params["cls_b"] = jnp.full((1, CLS_PAD), -1e9,
                               jnp.float32).at[0, :N_CLASSES].set(0.0)

    attn_scale = 1.0 / math.sqrt(HEAD_DIM)
    wqkv, wo, w1, w2, bqkv, bff1, hv = [], [], [], [], [], [], []
    zH, oH = jnp.zeros((HIDDEN,), jnp.float32), jnp.ones((HIDDEN,), jnp.float32)
    for _ in range(N_LAYERS):
        wq = normal(next(keys), (HIDDEN, HIDDEN)) * attn_scale   # fold 1/sqrt(d)
        wk = normal(next(keys), (HIDDEN, HIDDEN))
        wv = normal(next(keys), (HIDDEN, HIDDEN))
        wqkv.append(jnp.concatenate([wq, wk, wv], axis=1))       # (H, 3H)
        wo.append(normal(next(keys), (HIDDEN, HIDDEN)))
        w1.append(normal(next(keys), (HIDDEN, INTERMEDIATE)))
        w2.append(normal(next(keys), (INTERMEDIATE, HIDDEN)))
        bq = jnp.zeros((1, HIDDEN), jnp.float32) * attn_scale    # fold into Q bias
        bk = jnp.zeros((1, HIDDEN), jnp.float32)
        bv = jnp.zeros((1, HIDDEN), jnp.float32)
        bqkv.append(jnp.concatenate([bq, bk, bv], axis=1))       # (1, 3H)
        bff1.append(jnp.zeros((1, INTERMEDIATE), jnp.float32))
        # rows: b_o, ln1_g, ln1_b, b_ff2, ln2_g, ln2_b
        hv.append(jnp.stack([zH, oH, zH, zH, oH, zH], axis=0))

    params["wqkv"] = jnp.stack(wqkv).astype(jnp.bfloat16)        # (L, H, 3H)
    params["wo"] = jnp.stack(wo).astype(jnp.bfloat16)            # (L, H, H)
    params["w1"] = jnp.stack(w1).astype(jnp.bfloat16)            # (L, H, I)
    params["w2"] = jnp.stack(w2).astype(jnp.bfloat16)            # (L, I, H)
    params["bqkv"] = jnp.stack(bqkv)                             # (L, 1, 3H)
    params["bff1"] = jnp.stack(bff1)                             # (L, 1, I)
    params["hv"] = jnp.stack(hv)                                 # (L, 6, H)
    return params


# ------------------------------- full forward --------------------------------
def protein_classifier_forward(params, input_ids, attention_mask, dropout_key):
    B, S = input_ids.shape
    H, I, L = HIDDEN, INTERMEDIATE, N_LAYERS

    # embedding lookups are gather glue (plain JAX); everything else is fused
    e = (params["word_emb"][input_ids]
         + params["pos_emb"][:S][None, :, :]
         + params["type_emb"][0][None, None, :]).astype(jnp.float32)  # (B,S,H)

    # per-sequence padding mask; the additive bias is built inside the kernel
    mask = attention_mask.astype(jnp.float32).reshape(B, 1, S)

    # dropout keep/scale mask for the CLS vector. nn.Dropout is freshly
    # constructed inside forward() -> training mode -> dropout is active.
    # TODO(synk): RNG stream differs from torch; not bit-comparable (expected).
    keep = jax.random.bernoulli(dropout_key, 1.0 - DROPOUT_P, (B, 1, H))
    drop_scale = keep.astype(jnp.float32) / (1.0 - DROPOUT_P)

    out = pl.pallas_call(
        fused_forward_kernel,
        out_shape=jax.ShapeDtypeStruct((B, 1, CLS_PAD), jnp.float32),
        grid=(B,),
        in_specs=[
            pl.BlockSpec((None, S, H), lambda b: (b, 0, 0)),       # e (per batch)
            pl.BlockSpec((None, 1, S), lambda b: (b, 0, 0)),       # mask
            pl.BlockSpec((None, 1, H), lambda b: (b, 0, 0)),       # dropout mask
            pl.BlockSpec((2, H), lambda b: (0, 0)),                # emb_ln
            pl.BlockSpec((L, H, 3 * H), lambda b: (0, 0, 0)),      # wqkv
            pl.BlockSpec((L, H, H), lambda b: (0, 0, 0)),          # wo
            pl.BlockSpec((L, H, I), lambda b: (0, 0, 0)),          # w1
            pl.BlockSpec((L, I, H), lambda b: (0, 0, 0)),          # w2
            pl.BlockSpec((L, 1, 3 * H), lambda b: (0, 0, 0)),      # bqkv
            pl.BlockSpec((L, 1, I), lambda b: (0, 0, 0)),          # bff1
            pl.BlockSpec((L, 6, H), lambda b: (0, 0, 0)),          # hv
            pl.BlockSpec((H, CLS_PAD), lambda b: (0, 0)),          # cls_w
            pl.BlockSpec((1, CLS_PAD), lambda b: (0, 0)),          # cls_b
        ],
        out_specs=pl.BlockSpec((None, 1, CLS_PAD), lambda b: (b, 0, 0)),
        compiler_params=pltpu.CompilerParams(
            dimension_semantics=("parallel",),     # shard batch across TCs (v7x)
            vmem_limit_bytes=8 * 1024 * 1024,      # >> ~200 KB resident footprint
        ),
    )(e, mask, drop_scale, params["emb_ln"],
      params["wqkv"], params["wo"], params["w1"], params["w2"],
      params["bqkv"], params["bff1"], params["hv"],
      params["cls_w"], params["cls_b"])

    return out.reshape(B, CLS_PAD)[:, :N_CLASSES]


# ----------------------------------- main ------------------------------------
if __name__ == "__main__":
    key = jax.random.PRNGKey(0)
    k_param, k_ids, k_drop = jax.random.split(key, 3)

    B, S = 2, 8
    params = init_params(k_param)
    input_ids = jax.random.randint(k_ids, (B, S), 0, VOCAB, dtype=jnp.int32)
    attention_mask = jnp.array([[1, 1, 1, 1, 1, 1, 1, 1],
                                [1, 1, 1, 1, 1, 0, 0, 0]], dtype=jnp.int32)

    log_probs = protein_classifier_forward(params, input_ids, attention_mask,
                                           k_drop)
    log_probs = jax.block_until_ready(log_probs)

    assert log_probs.shape == (B, N_CLASSES)
    assert bool(jnp.all(jnp.isfinite(log_probs)))
    # rows of exp(log_probs) should sum to ~1
    assert bool(jnp.all(jnp.abs(jnp.sum(jnp.exp(log_probs), axis=1) - 1.0) < 1e-4))
    print("KERNEL_OK")
</pallas_src>

<mosaic_0001>
module attributes {stable_mosaic.version = 11 : i64} {
  func.func @fused_forward_kernel(%arg0: i32, %arg1: memref<1x8x64xf32, #tpu.memory_space<vmem>>, %arg2: memref<1x1x8xf32, #tpu.memory_space<vmem>>, %arg3: memref<1x1x64xf32, #tpu.memory_space<vmem>>, %arg4: memref<2x64xf32, #tpu.memory_space<vmem>>, %arg5: memref<2x64x192xbf16, #tpu.memory_space<vmem>>, %arg6: memref<2x64x64xbf16, #tpu.memory_space<vmem>>, %arg7: memref<2x64x128xbf16, #tpu.memory_space<vmem>>, %arg8: memref<2x128x64xbf16, #tpu.memory_space<vmem>>, %arg9: memref<2x1x192xf32, #tpu.memory_space<vmem>>, %arg10: memref<2x1x128xf32, #tpu.memory_space<vmem>>, %arg11: memref<2x6x64xf32, #tpu.memory_space<vmem>>, %arg12: memref<64x128xbf16, #tpu.memory_space<vmem>>, %arg13: memref<1x128xf32, #tpu.memory_space<vmem>>, %arg14: memref<1x1x128xf32, #tpu.memory_space<vmem>>) attributes {dimension_semantics = [#tpu.dimension_semantics<parallel>], iteration_bounds = array<i64: 2>, scalar_prefetch = 0 : i64, scratch_operands = 0 : i64, tpu.core_type = #tpu.core_type<tc>, window_params = [{transform_indices = @transform_0, window_bounds = array<i64: 1, 8, 64>}, {transform_indices = @transform_1, window_bounds = array<i64: 1, 1, 8>}, {transform_indices = @transform_2, window_bounds = array<i64: 1, 1, 64>}, {pipeline_mode = #tpu.pipeline_mode<synchronous>, transform_indices = @transform_3, window_bounds = array<i64: 2, 64>}, {pipeline_mode = #tpu.pipeline_mode<synchronous>, transform_indices = @transform_4, window_bounds = array<i64: 2, 64, 192>}, {pipeline_mode = #tpu.pipeline_mode<synchronous>, transform_indices = @transform_5, window_bounds = array<i64: 2, 64, 64>}, {pipeline_mode = #tpu.pipeline_mode<synchronous>, transform_indices = @transform_6, window_bounds = array<i64: 2, 64, 128>}, {pipeline_mode = #tpu.pipeline_mode<synchronous>, transform_indices = @transform_7, window_bounds = array<i64: 2, 128, 64>}, {pipeline_mode = #tpu.pipeline_mode<synchronous>, transform_indices = @transform_8, window_bounds = array<i64: 2, 1, 192>}, {pipeline_mode = #tpu.pipeline_mode<synchronous>, transform_indices = @transform_9, window_bounds = array<i64: 2, 1, 128>}, {pipeline_mode = #tpu.pipeline_mode<synchronous>, transform_indices = @transform_10, window_bounds = array<i64: 2, 6, 64>}, {pipeline_mode = #tpu.pipeline_mode<synchronous>, transform_indices = @transform_11, window_bounds = array<i64: 64, 128>}, {pipeline_mode = #tpu.pipeline_mode<synchronous>, transform_indices = @transform_12, window_bounds = array<i64: 1, 128>}, {transform_indices = @transform_13, window_bounds = array<i64: 1, 1, 128>}]} {
    %c0 = arith.constant 0 : index
    %c0_0 = arith.constant 0 : index
    %c0_1 = arith.constant 0 : index
    %0 = vector.load %arg1[%c0, %c0_0, %c0_1] : memref<1x8x64xf32, #tpu.memory_space<vmem>>, vector<1x8x64xf32>
    %1 = vector.shape_cast %0 : vector<1x8x64xf32> to vector<8x64xf32>
    %c0_2 = arith.constant 0 : index
    %c0_3 = arith.constant 0 : index
    %2 = vector.load %arg4[%c0_2, %c0_3] : memref<2x64xf32, #tpu.memory_space<vmem>>, vector<1x64xf32>
    %c1 = arith.constant 1 : index
    %c0_4 = arith.constant 0 : index
    %3 = vector.load %arg4[%c1, %c0_4] : memref<2x64xf32, #tpu.memory_space<vmem>>, vector<1x64xf32>
    %cst = arith.constant dense<0.000000e+00> : vector<8xf32>
    %4 = vector.multi_reduction <add>, %1, %cst [1] : vector<8x64xf32> to vector<8xf32>
    %5 = vector.shape_cast %4 : vector<8xf32> to vector<8x1xf32>
    %cst_5 = arith.constant 6.400000e+01 : f32
    %6 = vector.broadcast %cst_5 : f32 to vector<8x1xf32>
    %7 = arith.divf %5, %6 : vector<8x1xf32>
    %8 = vector.broadcast %7 : vector<8x1xf32> to vector<8x64xf32>
    %9 = arith.subf %1, %8 : vector<8x64xf32>
    %10 = arith.mulf %9, %9 : vector<8x64xf32>
    %cst_6 = arith.constant dense<0.000000e+00> : vector<8xf32>
    %11 = vector.multi_reduction <add>, %10, %cst_6 [1] : vector<8x64xf32> to vector<8xf32>
    %12 = vector.shape_cast %11 : vector<8xf32> to vector<8x1xf32>
    %cst_7 = arith.constant 6.400000e+01 : f32
    %13 = vector.broadcast %cst_7 : f32 to vector<8x1xf32>
    %14 = arith.divf %12, %13 : vector<8x1xf32>
    %15 = vector.broadcast %7 : vector<8x1xf32> to vector<8x64xf32>
    %16 = arith.subf %1, %15 : vector<8x64xf32>
    %cst_8 = arith.constant 9.99999996E-13 : f32
    %17 = vector.broadcast %cst_8 : f32 to vector<8x1xf32>
    %18 = arith.addf %14, %17 : vector<8x1xf32>
    %19 = math.rsqrt %18 : vector<8x1xf32>
    %20 = vector.broadcast %19 : vector<8x1xf32> to vector<8x64xf32>
    %21 = arith.mulf %16, %20 : vector<8x64xf32>
    %22 = vector.broadcast %2 : vector<1x64xf32> to vector<8x64xf32>
    %23 = arith.mulf %21, %22 : vector<8x64xf32>
    %24 = vector.broadcast %3 : vector<1x64xf32> to vector<8x64xf32>
    %25 = arith.addf %23, %24 : vector<8x64xf32>
    %c0_9 = arith.constant 0 : index
    %c0_10 = arith.constant 0 : index
    %c0_11 = arith.constant 0 : index
    %26 = vector.load %arg2[%c0_9, %c0_10, %c0_11] : memref<1x1x8xf32, #tpu.memory_space<vmem>>, vector<1x1x8xf32>
    %27 = vector.shape_cast %26 : vector<1x1x8xf32> to vector<1x8xf32>
    %cst_12 = arith.constant 1.000000e+00 : f32
    %28 = vector.broadcast %cst_12 : f32 to vector<1x8xf32>
    %29 = arith.subf %28, %27 : vector<1x8xf32>
    %cst_13 = arith.constant -1.000000e+04 : f32
    %30 = vector.broadcast %cst_13 : f32 to vector<1x8xf32>
    %31 = arith.mulf %29, %30 : vector<1x8xf32>
    %c0_14 = arith.constant 0 : index
    %c0_15 = arith.constant 0 : index
    %c0_16 = arith.constant 0 : index
    %32 = vector.load %arg5[%c0_14, %c0_15, %c0_16] : memref<2x64x192xbf16, #tpu.memory_space<vmem>>, vector<1x64x192xbf16>
    %33 = vector.shape_cast %32 : vector<1x64x192xbf16> to vector<64x192xbf16>
    %c0_17 = arith.constant 0 : index
    %c0_18 = arith.constant 0 : index
    %c0_19 = arith.constant 0 : index
    %34 = vector.load %arg6[%c0_17, %c0_18, %c0_19] : memref<2x64x64xbf16, #tpu.memory_space<vmem>>, vector<1x64x64xbf16>
    %35 = vector.shape_cast %34 : vector<1x64x64xbf16> to vector<64x64xbf16>
    %c0_20 = arith.constant 0 : index
    %c0_21 = arith.constant 0 : index
    %c0_22 = arith.constant 0 : index
    %36 = vector.load %arg7[%c0_20, %c0_21, %c0_22] : memref<2x64x128xbf16, #tpu.memory_space<vmem>>, vector<1x64x128xbf16>
    %37 = vector.shape_cast %36 : vector<1x64x128xbf16> to vector<64x128xbf16>
    %c0_23 = arith.constant 0 : index
    %c0_24 = arith.constant 0 : index
    %c0_25 = arith.constant 0 : index
    %38 = vector.load %arg8[%c0_23, %c0_24, %c0_25] : memref<2x128x64xbf16, #tpu.memory_space<vmem>>, vector<1x128x64xbf16>
    %39 = vector.shape_cast %38 : vector<1x128x64xbf16> to vector<128x64xbf16>
    %c0_26 = arith.constant 0 : index
    %c0_27 = arith.constant 0 : index
    %c0_28 = arith.constant 0 : index
    %40 = vector.load %arg9[%c0_26, %c0_27, %c0_28] : memref<2x1x192xf32, #tpu.memory_space<vmem>>, vector<1x1x192xf32>
    %41 = vector.shape_cast %40 : vector<1x1x192xf32> to vector<1x192xf32>
    %c0_29 = arith.constant 0 : index
    %c0_30 = arith.constant 0 : index
    %c0_31 = arith.constant 0 : index
    %42 = vector.load %arg10[%c0_29, %c0_30, %c0_31] : memref<2x1x128xf32, #tpu.memory_space<vmem>>, vector<1x1x128xf32>
    %43 = vector.shape_cast %42 : vector<1x1x128xf32> to vector<1x128xf32>
    %c0_32 = arith.constant 0 : index
    %c0_33 = arith.constant 0 : index
    %c0_34 = arith.constant 0 : index
    %44 = vector.load %arg11[%c0_32, %c0_33, %c0_34] : memref<2x6x64xf32, #tpu.memory_space<vmem>>, vector<1x6x64xf32>
    %45 = vector.shape_cast %44 : vector<1x6x64xf32> to vector<6x64xf32>
    %46 = vector.extract_strided_slice %45 {offsets = [0, 0], sizes = [1, 64], strides = [1, 1]} : vector<6x64xf32> to vector<1x64xf32>
    %47 = vector.extract_strided_slice %45 {offsets = [1, 0], sizes = [1, 64], strides = [1, 1]} : vector<6x64xf32> to vector<1x64xf32>
    %48 = vector.extract_strided_slice %45 {offsets = [2, 0], sizes = [1, 64], strides = [1, 1]} : vector<6x64xf32> to vector<1x64xf32>
    %49 = vector.extract_strided_slice %45 {offsets = [3, 0], sizes = [1, 64], strides = [1, 1]} : vector<6x64xf32> to vector<1x64xf32>
    %50 = vector.extract_strided_slice %45 {offsets = [4, 0], sizes = [1, 64], strides = [1, 1]} : vector<6x64xf32> to vector<1x64xf32>
    %51 = vector.extract_strided_slice %45 {offsets = [5, 0], sizes = [1, 64], strides = [1, 1]} : vector<6x64xf32> to vector<1x64xf32>
    %52 = arith.truncf %25 : vector<8x64xf32> to vector<8x64xbf16>
    %cst_35 = arith.constant dense<0.000000e+00> : vector<8x192xf32>
    %53 = tpu.matmul %52, %33, %cst_35 {dimension_numbers = #tpu.dot_dimension_numbers<[1], [0], [0], [1], [0, 0, 1, 1], [], []>} : vector<8x64xbf16>, vector<64x192xbf16>, vector<8x192xf32> -> vector<8x192xf32>
    %54 = vector.broadcast %41 : vector<1x192xf32> to vector<8x192xf32>
    %55 = arith.addf %53, %54 : vector<8x192xf32>
    %56 = vector.extract_strided_slice %55 {offsets = [0, 0], sizes = [8, 32], strides = [1, 1]} : vector<8x192xf32> to vector<8x32xf32>
    %57 = vector.extract_strided_slice %55 {offsets = [0, 64], sizes = [8, 32], strides = [1, 1]} : vector<8x192xf32> to vector<8x32xf32>
    %58 = vector.extract_strided_slice %55 {offsets = [0, 128], sizes = [8, 32], strides = [1, 1]} : vector<8x192xf32> to vector<8x32xf32>
    %59 = arith.truncf %56 : vector<8x32xf32> to vector<8x32xbf16>
    %60 = arith.truncf %57 : vector<8x32xf32> to vector<8x32xbf16>
    %cst_36 = arith.constant dense<0.000000e+00> : vector<8x8xf32>
    %61 = tpu.matmul %59, %60, %cst_36 {dimension_numbers = #tpu.dot_dimension_numbers<[1], [1], [0], [0], [0, 0, 1, 0], [], []>} : vector<8x32xbf16>, vector<8x32xbf16>, vector<8x8xf32> -> vector<8x8xf32>
    %62 = vector.broadcast %31 : vector<1x8xf32> to vector<8x8xf32>
    %63 = arith.addf %61, %62 : vector<8x8xf32>
    %cst_37 = arith.constant dense<0xFF800000> : vector<8xf32>
    %64 = vector.multi_reduction <maximumf>, %63, %cst_37 [1] : vector<8x8xf32> to vector<8xf32>
    %65 = vector.shape_cast %64 : vector<8xf32> to vector<8x1xf32>
    %66 = vector.broadcast %65 : vector<8x1xf32> to vector<8x8xf32>
    %67 = arith.subf %63, %66 : vector<8x8xf32>
    %68 = math.exp %67 : vector<8x8xf32>
    %cst_38 = arith.constant dense<0.000000e+00> : vector<8xf32>
    %69 = vector.multi_reduction <add>, %68, %cst_38 [1] : vector<8x8xf32> to vector<8xf32>
    %70 = vector.shape_cast %69 : vector<8xf32> to vector<8x1xf32>
    %71 = tpu.reciprocal %70 {approx = true} : vector<8x1xf32> -> vector<8x1xf32>
    %72 = vector.broadcast %71 : vector<8x1xf32> to vector<8x8xf32>
    %73 = arith.mulf %68, %72 : vector<8x8xf32>
    %74 = arith.truncf %73 : vector<8x8xf32> to vector<8x8xbf16>
    %75 = arith.truncf %58 : vector<8x32xf32> to vector<8x32xbf16>
    %cst_39 = arith.constant dense<0.000000e+00> : vector<8x32xf32>
    %76 = tpu.matmul %74, %75, %cst_39 {dimension_numbers = #tpu.dot_dimension_numbers<[1], [0], [0], [1], [0, 0, 1, 1], [], []>} : vector<8x8xbf16>, vector<8x32xbf16>, vector<8x32xf32> -> vector<8x32xf32>
    %77 = arith.truncf %76 : vector<8x32xf32> to vector<8x32xbf16>
    %78 = vector.extract_strided_slice %35 {offsets = [0, 0], sizes = [32, 64], strides = [1, 1]} : vector<64x64xbf16> to vector<32x64xbf16>
    %cst_40 = arith.constant dense<0.000000e+00> : vector<8x64xf32>
    %79 = tpu.matmul %77, %78, %cst_40 {dimension_numbers = #tpu.dot_dimension_numbers<[1], [0], [0], [1], [0, 0, 1, 1], [], []>} : vector<8x32xbf16>, vector<32x64xbf16>, vector<8x64xf32> -> vector<8x64xf32>
    %80 = vector.extract_strided_slice %55 {offsets = [0, 32], sizes = [8, 32], strides = [1, 1]} : vector<8x192xf32> to vector<8x32xf32>
    %81 = vector.extract_strided_slice %55 {offsets = [0, 96], sizes = [8, 32], strides = [1, 1]} : vector<8x192xf32> to vector<8x32xf32>
    %82 = vector.extract_strided_slice %55 {offsets = [0, 160], sizes = [8, 32], strides = [1, 1]} : vector<8x192xf32> to vector<8x32xf32>
    %83 = arith.truncf %80 : vector<8x32xf32> to vector<8x32xbf16>
    %84 = arith.truncf %81 : vector<8x32xf32> to vector<8x32xbf16>
    %cst_41 = arith.constant dense<0.000000e+00> : vector<8x8xf32>
    %85 = tpu.matmul %83, %84, %cst_41 {dimension_numbers = #tpu.dot_dimension_numbers<[1], [1], [0], [0], [0, 0, 1, 0], [], []>} : vector<8x32xbf16>, vector<8x32xbf16>, vector<8x8xf32> -> vector<8x8xf32>
    %86 = vector.broadcast %31 : vector<1x8xf32> to vector<8x8xf32>
    %87 = arith.addf %85, %86 : vector<8x8xf32>
    %cst_42 = arith.constant dense<0xFF800000> : vector<8xf32>
    %88 = vector.multi_reduction <maximumf>, %87, %cst_42 [1] : vector<8x8xf32> to vector<8xf32>
    %89 = vector.shape_cast %88 : vector<8xf32> to vector<8x1xf32>
    %90 = vector.broadcast %89 : vector<8x1xf32> to vector<8x8xf32>
    %91 = arith.subf %87, %90 : vector<8x8xf32>
    %92 = math.exp %91 : vector<8x8xf32>
    %cst_43 = arith.constant dense<0.000000e+00> : vector<8xf32>
    %93 = vector.multi_reduction <add>, %92, %cst_43 [1] : vector<8x8xf32> to vector<8xf32>
    %94 = vector.shape_cast %93 : vector<8xf32> to vector<8x1xf32>
    %95 = tpu.reciprocal %94 {approx = true} : vector<8x1xf32> -> vector<8x1xf32>
    %96 = vector.broadcast %95 : vector<8x1xf32> to vector<8x8xf32>
    %97 = arith.mulf %92, %96 : vector<8x8xf32>
    %98 = arith.truncf %97 : vector<8x8xf32> to vector<8x8xbf16>
    %99 = arith.truncf %82 : vector<8x32xf32> to vector<8x32xbf16>
    %cst_44 = arith.constant dense<0.000000e+00> : vector<8x32xf32>
    %100 = tpu.matmul %98, %99, %cst_44 {dimension_numbers = #tpu.dot_dimension_numbers<[1], [0], [0], [1], [0, 0, 1, 1], [], []>} : vector<8x8xbf16>, vector<8x32xbf16>, vector<8x32xf32> -> vector<8x32xf32>
    %101 = arith.truncf %100 : vector<8x32xf32> to vector<8x32xbf16>
    %102 = vector.extract_strided_slice %35 {offsets = [32, 0], sizes = [32, 64], strides = [1, 1]} : vector<64x64xbf16> to vector<32x64xbf16>
    %cst_45 = arith.constant dense<0.000000e+00> : vector<8x64xf32>
    %103 = tpu.matmul %101, %102, %cst_45 {dimension_numbers = #tpu.dot_dimension_numbers<[1], [0], [0], [1], [0, 0, 1, 1], [], []>} : vector<8x32xbf16>, vector<32x64xbf16>, vector<8x64xf32> -> vector<8x64xf32>
    %104 = arith.addf %79, %103 : vector<8x64xf32>
    %105 = vector.broadcast %46 : vector<1x64xf32> to vector<8x64xf32>
    %106 = arith.addf %104, %105 : vector<8x64xf32>
    %107 = arith.addf %25, %106 : vector<8x64xf32>
    %cst_46 = arith.constant dense<0.000000e+00> : vector<8xf32>
    %108 = vector.multi_reduction <add>, %107, %cst_46 [1] : vector<8x64xf32> to vector<8xf32>
    %109 = vector.shape_cast %108 : vector<8xf32> to vector<8x1xf32>
    %cst_47 = arith.constant 6.400000e+01 : f32
    %110 = vector.broadcast %cst_47 : f32 to vector<8x1xf32>
    %111 = arith.divf %109, %110 : vector<8x1xf32>
    %112 = vector.broadcast %111 : vector<8x1xf32> to vector<8x64xf32>
    %113 = arith.subf %107, %112 : vector<8x64xf32>
    %114 = arith.mulf %113, %113 : vector<8x64xf32>
    %cst_48 = arith.constant dense<0.000000e+00> : vector<8xf32>
    %115 = vector.multi_reduction <add>, %114, %cst_48 [1] : vector<8x64xf32> to vector<8xf32>
    %116 = vector.shape_cast %115 : vector<8xf32> to vector<8x1xf32>
    %cst_49 = arith.constant 6.400000e+01 : f32
    %117 = vector.broadcast %cst_49 : f32 to vector<8x1xf32>
    %118 = arith.divf %116, %117 : vector<8x1xf32>
    %119 = vector.broadcast %111 : vector<8x1xf32> to vector<8x64xf32>
    %120 = arith.subf %107, %119 : vector<8x64xf32>
    %cst_50 = arith.constant 9.99999996E-13 : f32
    %121 = vector.broadcast %cst_50 : f32 to vector<8x1xf32>
    %122 = arith.addf %118, %121 : vector<8x1xf32>
    %123 = math.rsqrt %122 : vector<8x1xf32>
    %124 = vector.broadcast %123 : vector<8x1xf32> to vector<8x64xf32>
    %125 = arith.mulf %120, %124 : vector<8x64xf32>
    %126 = vector.broadcast %47 : vector<1x64xf32> to vector<8x64xf32>
    %127 = arith.mulf %125, %126 : vector<8x64xf32>
    %128 = vector.broadcast %48 : vector<1x64xf32> to vector<8x64xf32>
    %129 = arith.addf %127, %128 : vector<8x64xf32>
    %130 = arith.truncf %129 : vector<8x64xf32> to vector<8x64xbf16>
    %cst_51 = arith.constant dense<0.000000e+00> : vector<8x128xf32>
    %131 = tpu.matmul %130, %37, %cst_51 {dimension_numbers = #tpu.dot_dimension_numbers<[1], [0], [0], [1], [0, 0, 1, 1], [], []>} : vector<8x64xbf16>, vector<64x128xbf16>, vector<8x128xf32> -> vector<8x128xf32>
    %132 = vector.broadcast %43 : vector<1x128xf32> to vector<8x128xf32>
    %133 = arith.addf %131, %132 : vector<8x128xf32>
    %134 = arith.mulf %133, %133 : vector<8x128xf32>
    %135 = arith.mulf %133, %134 : vector<8x128xf32>
    %cst_52 = arith.constant 4.471500e-02 : f32
    %136 = vector.broadcast %cst_52 : f32 to vector<8x128xf32>
    %137 = arith.mulf %136, %135 : vector<8x128xf32>
    %138 = arith.addf %133, %137 : vector<8x128xf32>
    %cst_53 = arith.constant 0.797884583 : f32
    %139 = vector.broadcast %cst_53 : f32 to vector<8x128xf32>
    %140 = arith.mulf %139, %138 : vector<8x128xf32>
    %141 = math.tanh %140 : vector<8x128xf32>
    %cst_54 = arith.constant 1.000000e+00 : f32
    %142 = vector.broadcast %cst_54 : f32 to vector<8x128xf32>
    %143 = arith.addf %142, %141 : vector<8x128xf32>
    %cst_55 = arith.constant 5.000000e-01 : f32
    %144 = vector.broadcast %cst_55 : f32 to vector<8x128xf32>
    %145 = arith.mulf %144, %143 : vector<8x128xf32>
    %146 = arith.mulf %133, %145 : vector<8x128xf32>
    %147 = arith.truncf %146 : vector<8x128xf32> to vector<8x128xbf16>
    %cst_56 = arith.constant dense<0.000000e+00> : vector<8x64xf32>
    %148 = tpu.matmul %147, %39, %cst_56 {dimension_numbers = #tpu.dot_dimension_numbers<[1], [0], [0], [1], [0, 0, 1, 1], [], []>} : vector<8x128xbf16>, vector<128x64xbf16>, vector<8x64xf32> -> vector<8x64xf32>
    %149 = vector.broadcast %49 : vector<1x64xf32> to vector<8x64xf32>
    %150 = arith.addf %148, %149 : vector<8x64xf32>
    %151 = arith.addf %129, %150 : vector<8x64xf32>
    %cst_57 = arith.constant dense<0.000000e+00> : vector<8xf32>
    %152 = vector.multi_reduction <add>, %151, %cst_57 [1] : vector<8x64xf32> to vector<8xf32>
    %153 = vector.shape_cast %152 : vector<8xf32> to vector<8x1xf32>
    %cst_58 = arith.constant 6.400000e+01 : f32
    %154 = vector.broadcast %cst_58 : f32 to vector<8x1xf32>
    %155 = arith.divf %153, %154 : vector<8x1xf32>
    %156 = vector.broadcast %155 : vector<8x1xf32> to vector<8x64xf32>
    %157 = arith.subf %151, %156 : vector<8x64xf32>
    %158 = arith.mulf %157, %157 : vector<8x64xf32>
    %cst_59 = arith.constant dense<0.000000e+00> : vector<8xf32>
    %159 = vector.multi_reduction <add>, %158, %cst_59 [1] : vector<8x64xf32> to vector<8xf32>
    %160 = vector.shape_cast %159 : vector<8xf32> to vector<8x1xf32>
    %cst_60 = arith.constant 6.400000e+01 : f32
    %161 = vector.broadcast %cst_60 : f32 to vector<8x1xf32>
    %162 = arith.divf %160, %161 : vector<8x1xf32>
    %163 = vector.broadcast %155 : vector<8x1xf32> to vector<8x64xf32>
    %164 = arith.subf %151, %163 : vector<8x64xf32>
    %cst_61 = arith.constant 9.99999996E-13 : f32
    %165 = vector.broadcast %cst_61 : f32 to vector<8x1xf32>
    %166 = arith.addf %162, %165 : vector<8x1xf32>
    %167 = math.rsqrt %166 : vector<8x1xf32>
    %168 = vector.broadcast %167 : vector<8x1xf32> to vector<8x64xf32>
    %169 = arith.mulf %164, %168 : vector<8x64xf32>
    %170 = vector.broadcast %50 : vector<1x64xf32> to vector<8x64xf32>
    %171 = arith.mulf %169, %170 : vector<8x64xf32>
    %172 = vector.broadcast %51 : vector<1x64xf32> to vector<8x64xf32>
    %173 = arith.addf %171, %172 : vector<8x64xf32>
    %c1_62 = arith.constant 1 : index
    %c0_63 = arith.constant 0 : index
    %c0_64 = arith.constant 0 : index
    %174 = vector.load %arg5[%c1_62, %c0_63, %c0_64] : memref<2x64x192xbf16, #tpu.memory_space<vmem>>, vector<1x64x192xbf16>
    %175 = vector.shape_cast %174 : vector<1x64x192xbf16> to vector<64x192xbf16>
    %c1_65 = arith.constant 1 : index
    %c0_66 = arith.constant 0 : index
    %c0_67 = arith.constant 0 : index
    %176 = vector.load %arg6[%c1_65, %c0_66, %c0_67] : memref<2x64x64xbf16, #tpu.memory_space<vmem>>, vector<1x64x64xbf16>
    %177 = vector.shape_cast %176 : vector<1x64x64xbf16> to vector<64x64xbf16>
    %c1_68 = arith.constant 1 : index
    %c0_69 = arith.constant 0 : index
    %c0_70 = arith.constant 0 : index
    %178 = vector.load %arg7[%c1_68, %c0_69, %c0_70] : memref<2x64x128xbf16, #tpu.memory_space<vmem>>, vector<1x64x128xbf16>
    %179 = vector.shape_cast %178 : vector<1x64x128xbf16> to vector<64x128xbf16>
    %c1_71 = arith.constant 1 : index
    %c0_72 = arith.constant 0 : index
    %c0_73 = arith.constant 0 : index
    %180 = vector.load %arg8[%c1_71, %c0_72, %c0_73] : memref<2x128x64xbf16, #tpu.memory_space<vmem>>, vector<1x128x64xbf16>
    %181 = vector.shape_cast %180 : vector<1x128x64xbf16> to vector<128x64xbf16>
    %c1_74 = arith.constant 1 : index
    %c0_75 = arith.constant 0 : index
    %c0_76 = arith.constant 0 : index
    %182 = vector.load %arg9[%c1_74, %c0_75, %c0_76] : memref<2x1x192xf32, #tpu.memory_space<vmem>>, vector<1x1x192xf32>
    %183 = vector.shape_cast %182 : vector<1x1x192xf32> to vector<1x192xf32>
    %c1_77 = arith.constant 1 : index
    %c0_78 = arith.constant 0 : index
    %c0_79 = arith.constant 0 : index
    %184 = vector.load %arg10[%c1_77, %c0_78, %c0_79] : memref<2x1x128xf32, #tpu.memory_space<vmem>>, vector<1x1x128xf32>
    %185 = vector.shape_cast %184 : vector<1x1x128xf32> to vector<1x128xf32>
    %c1_80 = arith.constant 1 : index
    %c0_81 = arith.constant 0 : index
    %c0_82 = arith.constant 0 : index
    %186 = vector.load %arg11[%c1_80, %c0_81, %c0_82] : memref<2x6x64xf32, #tpu.memory_space<vmem>>, vector<1x6x64xf32>
    %187 = vector.shape_cast %186 : vector<1x6x64xf32> to vector<6x64xf32>
    %188 = vector.extract_strided_slice %187 {offsets = [0, 0], sizes = [1, 64], strides = [1, 1]} : vector<6x64xf32> to vector<1x64xf32>
    %189 = vector.extract_strided_slice %187 {offsets = [1, 0], sizes = [1, 64], strides = [1, 1]} : vector<6x64xf32> to vector<1x64xf32>
    %190 = vector.extract_strided_slice %187 {offsets = [2, 0], sizes = [1, 64], strides = [1, 1]} : vector<6x64xf32> to vector<1x64xf32>
    %191 = vector.extract_strided_slice %187 {offsets = [3, 0], sizes = [1, 64], strides = [1, 1]} : vector<6x64xf32> to vector<1x64xf32>
    %192 = vector.extract_strided_slice %187 {offsets = [4, 0], sizes = [1, 64], strides = [1, 1]} : vector<6x64xf32> to vector<1x64xf32>
    %193 = vector.extract_strided_slice %187 {offsets = [5, 0], sizes = [1, 64], strides = [1, 1]} : vector<6x64xf32> to vector<1x64xf32>
    %194 = arith.truncf %173 : vector<8x64xf32> to vector<8x64xbf16>
    %cst_83 = arith.constant dense<0.000000e+00> : vector<8x192xf32>
    %195 = tpu.matmul %194, %175, %cst_83 {dimension_numbers = #tpu.dot_dimension_numbers<[1], [0], [0], [1], [0, 0, 1, 1], [], []>} : vector<8x64xbf16>, vector<64x192xbf16>, vector<8x192xf32> -> vector<8x192xf32>
    %196 = vector.broadcast %183 : vector<1x192xf32> to vector<8x192xf32>
    %197 = arith.addf %195, %196 : vector<8x192xf32>
    %198 = vector.extract_strided_slice %197 {offsets = [0, 0], sizes = [8, 32], strides = [1, 1]} : vector<8x192xf32> to vector<8x32xf32>
    %199 = vector.extract_strided_slice %197 {offsets = [0, 64], sizes = [8, 32], strides = [1, 1]} : vector<8x192xf32> to vector<8x32xf32>
    %200 = vector.extract_strided_slice %197 {offsets = [0, 128], sizes = [8, 32], strides = [1, 1]} : vector<8x192xf32> to vector<8x32xf32>
    %201 = arith.truncf %198 : vector<8x32xf32> to vector<8x32xbf16>
    %202 = arith.truncf %199 : vector<8x32xf32> to vector<8x32xbf16>
    %cst_84 = arith.constant dense<0.000000e+00> : vector<8x8xf32>
    %203 = tpu.matmul %201, %202, %cst_84 {dimension_numbers = #tpu.dot_dimension_numbers<[1], [1], [0], [0], [0, 0, 1, 0], [], []>} : vector<8x32xbf16>, vector<8x32xbf16>, vector<8x8xf32> -> vector<8x8xf32>
    %204 = vector.broadcast %31 : vector<1x8xf32> to vector<8x8xf32>
    %205 = arith.addf %203, %204 : vector<8x8xf32>
    %cst_85 = arith.constant dense<0xFF800000> : vector<8xf32>
    %206 = vector.multi_reduction <maximumf>, %205, %cst_85 [1] : vector<8x8xf32> to vector<8xf32>
    %207 = vector.shape_cast %206 : vector<8xf32> to vector<8x1xf32>
    %208 = vector.broadcast %207 : vector<8x1xf32> to vector<8x8xf32>
    %209 = arith.subf %205, %208 : vector<8x8xf32>
    %210 = math.exp %209 : vector<8x8xf32>
    %cst_86 = arith.constant dense<0.000000e+00> : vector<8xf32>
    %211 = vector.multi_reduction <add>, %210, %cst_86 [1] : vector<8x8xf32> to vector<8xf32>
    %212 = vector.shape_cast %211 : vector<8xf32> to vector<8x1xf32>
    %213 = tpu.reciprocal %212 {approx = true} : vector<8x1xf32> -> vector<8x1xf32>
    %214 = vector.broadcast %213 : vector<8x1xf32> to vector<8x8xf32>
    %215 = arith.mulf %210, %214 : vector<8x8xf32>
    %216 = arith.truncf %215 : vector<8x8xf32> to vector<8x8xbf16>
    %217 = arith.truncf %200 : vector<8x32xf32> to vector<8x32xbf16>
    %cst_87 = arith.constant dense<0.000000e+00> : vector<8x32xf32>
    %218 = tpu.matmul %216, %217, %cst_87 {dimension_numbers = #tpu.dot_dimension_numbers<[1], [0], [0], [1], [0, 0, 1, 1], [], []>} : vector<8x8xbf16>, vector<8x32xbf16>, vector<8x32xf32> -> vector<8x32xf32>
    %219 = arith.truncf %218 : vector<8x32xf32> to vector<8x32xbf16>
    %220 = vector.extract_strided_slice %177 {offsets = [0, 0], sizes = [32, 64], strides = [1, 1]} : vector<64x64xbf16> to vector<32x64xbf16>
    %cst_88 = arith.constant dense<0.000000e+00> : vector<8x64xf32>
    %221 = tpu.matmul %219, %220, %cst_88 {dimension_numbers = #tpu.dot_dimension_numbers<[1], [0], [0], [1], [0, 0, 1, 1], [], []>} : vector<8x32xbf16>, vector<32x64xbf16>, vector<8x64xf32> -> vector<8x64xf32>
    %222 = vector.extract_strided_slice %197 {offsets = [0, 32], sizes = [8, 32], strides = [1, 1]} : vector<8x192xf32> to vector<8x32xf32>
    %223 = vector.extract_strided_slice %197 {offsets = [0, 96], sizes = [8, 32], strides = [1, 1]} : vector<8x192xf32> to vector<8x32xf32>
    %224 = vector.extract_strided_slice %197 {offsets = [0, 160], sizes = [8, 32], strides = [1, 1]} : vector<8x192xf32> to vector<8x32xf32>
    %225 = arith.truncf %222 : vector<8x32xf32> to vector<8x32xbf16>
    %226 = arith.truncf %223 : vector<8x32xf32> to vector<8x32xbf16>
    %cst_89 = arith.constant dense<0.000000e+00> : vector<8x8xf32>
    %227 = tpu.matmul %225, %226, %cst_89 {dimension_numbers = #tpu.dot_dimension_numbers<[1], [1], [0], [0], [0, 0, 1, 0], [], []>} : vector<8x32xbf16>, vector<8x32xbf16>, vector<8x8xf32> -> vector<8x8xf32>
    %228 = vector.broadcast %31 : vector<1x8xf32> to vector<8x8xf32>
    %229 = arith.addf %227, %228 : vector<8x8xf32>
    %cst_90 = arith.constant dense<0xFF800000> : vector<8xf32>
    %230 = vector.multi_reduction <maximumf>, %229, %cst_90 [1] : vector<8x8xf32> to vector<8xf32>
    %231 = vector.shape_cast %230 : vector<8xf32> to vector<8x1xf32>
    %232 = vector.broadcast %231 : vector<8x1xf32> to vector<8x8xf32>
    %233 = arith.subf %229, %232 : vector<8x8xf32>
    %234 = math.exp %233 : vector<8x8xf32>
    %cst_91 = arith.constant dense<0.000000e+00> : vector<8xf32>
    %235 = vector.multi_reduction <add>, %234, %cst_91 [1] : vector<8x8xf32> to vector<8xf32>
    %236 = vector.shape_cast %235 : vector<8xf32> to vector<8x1xf32>
    %237 = tpu.reciprocal %236 {approx = true} : vector<8x1xf32> -> vector<8x1xf32>
    %238 = vector.broadcast %237 : vector<8x1xf32> to vector<8x8xf32>
    %239 = arith.mulf %234, %238 : vector<8x8xf32>
    %240 = arith.truncf %239 : vector<8x8xf32> to vector<8x8xbf16>
    %241 = arith.truncf %224 : vector<8x32xf32> to vector<8x32xbf16>
    %cst_92 = arith.constant dense<0.000000e+00> : vector<8x32xf32>
    %242 = tpu.matmul %240, %241, %cst_92 {dimension_numbers = #tpu.dot_dimension_numbers<[1], [0], [0], [1], [0, 0, 1, 1], [], []>} : vector<8x8xbf16>, vector<8x32xbf16>, vector<8x32xf32> -> vector<8x32xf32>
    %243 = arith.truncf %242 : vector<8x32xf32> to vector<8x32xbf16>
    %244 = vector.extract_strided_slice %177 {offsets = [32, 0], sizes = [32, 64], strides = [1, 1]} : vector<64x64xbf16> to vector<32x64xbf16>
    %cst_93 = arith.constant dense<0.000000e+00> : vector<8x64xf32>
    %245 = tpu.matmul %243, %244, %cst_93 {dimension_numbers = #tpu.dot_dimension_numbers<[1], [0], [0], [1], [0, 0, 1, 1], [], []>} : vector<8x32xbf16>, vector<32x64xbf16>, vector<8x64xf32> -> vector<8x64xf32>
    %246 = arith.addf %221, %245 : vector<8x64xf32>
    %247 = vector.broadcast %188 : vector<1x64xf32> to vector<8x64xf32>
    %248 = arith.addf %246, %247 : vector<8x64xf32>
    %249 = arith.addf %173, %248 : vector<8x64xf32>
    %cst_94 = arith.constant dense<0.000000e+00> : vector<8xf32>
    %250 = vector.multi_reduction <add>, %249, %cst_94 [1] : vector<8x64xf32> to vector<8xf32>
    %251 = vector.shape_cast %250 : vector<8xf32> to vector<8x1xf32>
    %cst_95 = arith.constant 6.400000e+01 : f32
    %252 = vector.broadcast %cst_95 : f32 to vector<8x1xf32>
    %253 = arith.divf %251, %252 : vector<8x1xf32>
    %254 = vector.broadcast %253 : vector<8x1xf32> to vector<8x64xf32>
    %255 = arith.subf %249, %254 : vector<8x64xf32>
    %256 = arith.mulf %255, %255 : vector<8x64xf32>
    %cst_96 = arith.constant dense<0.000000e+00> : vector<8xf32>
    %257 = vector.multi_reduction <add>, %256, %cst_96 [1] : vector<8x64xf32> to vector<8xf32>
    %258 = vector.shape_cast %257 : vector<8xf32> to vector<8x1xf32>
    %cst_97 = arith.constant 6.400000e+01 : f32
    %259 = vector.broadcast %cst_97 : f32 to vector<8x1xf32>
    %260 = arith.divf %258, %259 : vector<8x1xf32>
    %261 = vector.broadcast %253 : vector<8x1xf32> to vector<8x64xf32>
    %262 = arith.subf %249, %261 : vector<8x64xf32>
    %cst_98 = arith.constant 9.99999996E-13 : f32
    %263 = vector.broadcast %cst_98 : f32 to vector<8x1xf32>
    %264 = arith.addf %260, %263 : vector<8x1xf32>
    %265 = math.rsqrt %264 : vector<8x1xf32>
    %266 = vector.broadcast %265 : vector<8x1xf32> to vector<8x64xf32>
    %267 = arith.mulf %262, %266 : vector<8x64xf32>
    %268 = vector.broadcast %189 : vector<1x64xf32> to vector<8x64xf32>
    %269 = arith.mulf %267, %268 : vector<8x64xf32>
    %270 = vector.broadcast %190 : vector<1x64xf32> to vector<8x64xf32>
    %271 = arith.addf %269, %270 : vector<8x64xf32>
    %272 = arith.truncf %271 : vector<8x64xf32> to vector<8x64xbf16>
    %cst_99 = arith.constant dense<0.000000e+00> : vector<8x128xf32>
    %273 = tpu.matmul %272, %179, %cst_99 {dimension_numbers = #tpu.dot_dimension_numbers<[1], [0], [0], [1], [0, 0, 1, 1], [], []>} : vector<8x64xbf16>, vector<64x128xbf16>, vector<8x128xf32> -> vector<8x128xf32>
    %274 = vector.broadcast %185 : vector<1x128xf32> to vector<8x128xf32>
    %275 = arith.addf %273, %274 : vector<8x128xf32>
    %276 = arith.mulf %275, %275 : vector<8x128xf32>
    %277 = arith.mulf %275, %276 : vector<8x128xf32>
    %cst_100 = arith.constant 4.471500e-02 : f32
    %278 = vector.broadcast %cst_100 : f32 to vector<8x128xf32>
    %279 = arith.mulf %278, %277 : vector<8x128xf32>
    %280 = arith.addf %275, %279 : vector<8x128xf32>
    %cst_101 = arith.constant 0.797884583 : f32
    %281 = vector.broadcast %cst_101 : f32 to vector<8x128xf32>
    %282 = arith.mulf %281, %280 : vector<8x128xf32>
    %283 = math.tanh %282 : vector<8x128xf32>
    %cst_102 = arith.constant 1.000000e+00 : f32
    %284 = vector.broadcast %cst_102 : f32 to vector<8x128xf32>
    %285 = arith.addf %284, %283 : vector<8x128xf32>
    %cst_103 = arith.constant 5.000000e-01 : f32
    %286 = vector.broadcast %cst_103 : f32 to vector<8x128xf32>
    %287 = arith.mulf %286, %285 : vector<8x128xf32>
    %288 = arith.mulf %275, %287 : vector<8x128xf32>
    %289 = arith.truncf %288 : vector<8x128xf32> to vector<8x128xbf16>
    %cst_104 = arith.constant dense<0.000000e+00> : vector<8x64xf32>
    %290 = tpu.matmul %289, %181, %cst_104 {dimension_numbers = #tpu.dot_dimension_numbers<[1], [0], [0], [1], [0, 0, 1, 1], [], []>} : vector<8x128xbf16>, vector<128x64xbf16>, vector<8x64xf32> -> vector<8x64xf32>
    %291 = vector.broadcast %191 : vector<1x64xf32> to vector<8x64xf32>
    %292 = arith.addf %290, %291 : vector<8x64xf32>
    %293 = arith.addf %271, %292 : vector<8x64xf32>
    %cst_105 = arith.constant dense<0.000000e+00> : vector<8xf32>
    %294 = vector.multi_reduction <add>, %293, %cst_105 [1] : vector<8x64xf32> to vector<8xf32>
    %295 = vector.shape_cast %294 : vector<8xf32> to vector<8x1xf32>
    %cst_106 = arith.constant 6.400000e+01 : f32
    %296 = vector.broadcast %cst_106 : f32 to vector<8x1xf32>
    %297 = arith.divf %295, %296 : vector<8x1xf32>
    %298 = vector.broadcast %297 : vector<8x1xf32> to vector<8x64xf32>
    %299 = arith.subf %293, %298 : vector<8x64xf32>
    %300 = arith.mulf %299, %299 : vector<8x64xf32>
    %cst_107 = arith.constant dense<0.000000e+00> : vector<8xf32>
    %301 = vector.multi_reduction <add>, %300, %cst_107 [1] : vector<8x64xf32> to vector<8xf32>
    %302 = vector.shape_cast %301 : vector<8xf32> to vector<8x1xf32>
    %cst_108 = arith.constant 6.400000e+01 : f32
    %303 = vector.broadcast %cst_108 : f32 to vector<8x1xf32>
    %304 = arith.divf %302, %303 : vector<8x1xf32>
    %305 = vector.broadcast %297 : vector<8x1xf32> to vector<8x64xf32>
    %306 = arith.subf %293, %305 : vector<8x64xf32>
    %cst_109 = arith.constant 9.99999996E-13 : f32
    %307 = vector.broadcast %cst_109 : f32 to vector<8x1xf32>
    %308 = arith.addf %304, %307 : vector<8x1xf32>
    %309 = math.rsqrt %308 : vector<8x1xf32>
    %310 = vector.broadcast %309 : vector<8x1xf32> to vector<8x64xf32>
    %311 = arith.mulf %306, %310 : vector<8x64xf32>
    %312 = vector.broadcast %192 : vector<1x64xf32> to vector<8x64xf32>
    %313 = arith.mulf %311, %312 : vector<8x64xf32>
    %314 = vector.broadcast %193 : vector<1x64xf32> to vector<8x64xf32>
    %315 = arith.addf %313, %314 : vector<8x64xf32>
    %316 = vector.extract_strided_slice %315 {offsets = [0, 0], sizes = [1, 64], strides = [1, 1]} : vector<8x64xf32> to vector<1x64xf32>
    %c0_110 = arith.constant 0 : index
    %c0_111 = arith.constant 0 : index
    %c0_112 = arith.constant 0 : index
    %317 = vector.load %arg3[%c0_110, %c0_111, %c0_112] : memref<1x1x64xf32, #tpu.memory_space<vmem>>, vector<1x1x64xf32>
    %318 = vector.shape_cast %317 : vector<1x1x64xf32> to vector<1x64xf32>
    %319 = arith.mulf %316, %318 : vector<1x64xf32>
    %cst_113 = arith.constant 0.000000e+00 : f32
    %320 = vector.broadcast %cst_113 : f32 to vector<1x64xf32>
    %321 = arith.maximumf %319, %320 : vector<1x64xf32>
    %322 = arith.truncf %321 : vector<1x64xf32> to vector<1x64xbf16>
    %c0_114 = arith.constant 0 : index
    %c0_115 = arith.constant 0 : index
    %323 = vector.load %arg12[%c0_114, %c0_115] : memref<64x128xbf16, #tpu.memory_space<vmem>>, vector<64x128xbf16>
    %cst_116 = arith.constant dense<0.000000e+00> : vector<1x128xf32>
    %324 = tpu.matmul %322, %323, %cst_116 {dimension_numbers = #tpu.dot_dimension_numbers<[1], [0], [0], [1], [0, 0, 1, 1], [], []>} : vector<1x64xbf16>, vector<64x128xbf16>, vector<1x128xf32> -> vector<1x128xf32>
    %c0_117 = arith.constant 0 : index
    %c0_118 = arith.constant 0 : index
    %325 = vector.load %arg13[%c0_117, %c0_118] : memref<1x128xf32, #tpu.memory_space<vmem>>, vector<1x128xf32>
    %326 = arith.addf %324, %325 : vector<1x128xf32>
    %cst_119 = arith.constant dense<0xFF800000> : vector<1xf32>
    %327 = vector.multi_reduction <maximumf>, %326, %cst_119 [1] : vector<1x128xf32> to vector<1xf32>
    %328 = vector.shape_cast %327 : vector<1xf32> to vector<1x1xf32>
    %329 = vector.broadcast %328 : vector<1x1xf32> to vector<1x128xf32>
    %330 = arith.subf %326, %329 : vector<1x128xf32>
    %331 = math.exp %330 : vector<1x128xf32>
    %cst_120 = arith.constant dense<0.000000e+00> : vector<1xf32>
    %332 = vector.multi_reduction <add>, %331, %cst_120 [1] : vector<1x128xf32> to vector<1xf32>
    %333 = vector.shape_cast %332 : vector<1xf32> to vector<1x1xf32>
    %334 = math.log %333 : vector<1x1xf32>
    %335 = vector.broadcast %334 : vector<1x1xf32> to vector<1x128xf32>
    %336 = arith.subf %330, %335 : vector<1x128xf32>
    %c0_121 = arith.constant 0 : index
    %c0_122 = arith.constant 0 : index
    %c0_123 = arith.constant 0 : index
    %337 = vector.load %arg14[%c0_121, %c0_122, %c0_123] : memref<1x1x128xf32, #tpu.memory_space<vmem>>, vector<1x1x128xf32>
    %338 = vector.shape_cast %337 : vector<1x1x128xf32> to vector<1x128xf32>
    %339 = vector.shape_cast %336 : vector<1x128xf32> to vector<1x1x128xf32>
    tpu.vector_store %arg14[%c0_121, %c0_122, %c0_123], %339 {strides = array<i32>} : memref<1x1x128xf32, #tpu.memory_space<vmem>>, vector<1x1x128xf32>,
    return
  }
  func.func @transform_0(%arg0: i32) -> (i32, i32, i32) {
    %c0_i32 = arith.constant 0 : i32
    %c0_i32_0 = arith.constant 0 : i32
    %c0_i32_1 = arith.constant 0 : i32
    return %arg0, %c0_i32, %c0_i32_0 : i32, i32, i32
  }
  func.func @transform_1(%arg0: i32) -> (i32, i32, i32) {
    %c0_i32 = arith.constant 0 : i32
    %c0_i32_0 = arith.constant 0 : i32
    %c0_i32_1 = arith.constant 0 : i32
    return %arg0, %c0_i32, %c0_i32_0 : i32, i32, i32
  }
  func.func @transform_2(%arg0: i32) -> (i32, i32, i32) {
    %c0_i32 = arith.constant 0 : i32
    %c0_i32_0 = arith.constant 0 : i32
    %c0_i32_1 = arith.constant 0 : i32
    return %arg0, %c0_i32, %c0_i32_0 : i32, i32, i32
  }
  func.func @transform_3(%arg0: i32) -> (i32, i32) {
    %c0_i32 = arith.constant 0 : i32
    %c0_i32_0 = arith.constant 0 : i32
    %c0_i32_1 = arith.constant 0 : i32
    return %c0_i32, %c0_i32_0 : i32, i32
  }
  func.func @transform_4(%arg0: i32) -> (i32, i32, i32) {
    %c0_i32 = arith.constant 0 : i32
    %c0_i32_0 = arith.constant 0 : i32
    %c0_i32_1 = arith.constant 0 : i32
    %c0_i32_2 = arith.constant 0 : i32
    return %c0_i32, %c0_i32_0, %c0_i32_1 : i32, i32, i32
  }
  func.func @transform_5(%arg0: i32) -> (i32, i32, i32) {
    %c0_i32 = arith.constant 0 : i32
    %c0_i32_0 = arith.constant 0 : i32
    %c0_i32_1 = arith.constant 0 : i32
    %c0_i32_2 = arith.constant 0 : i32
    return %c0_i32, %c0_i32_0, %c0_i32_1 : i32, i32, i32
  }
  func.func @transform_6(%arg0: i32) -> (i32, i32, i32) {
    %c0_i32 = arith.constant 0 : i32
    %c0_i32_0 = arith.constant 0 : i32
    %c0_i32_1 = arith.constant 0 : i32
    %c0_i32_2 = arith.constant 0 : i32
    return %c0_i32, %c0_i32_0, %c0_i32_1 : i32, i32, i32
  }
  func.func @transform_7(%arg0: i32) -> (i32, i32, i32) {
    %c0_i32 = arith.constant 0 : i32
    %c0_i32_0 = arith.constant 0 : i32
    %c0_i32_1 = arith.constant 0 : i32
    %c0_i32_2 = arith.constant 0 : i32
    return %c0_i32, %c0_i32_0, %c0_i32_1 : i32, i32, i32
  }
  func.func @transform_8(%arg0: i32) -> (i32, i32, i32) {
    %c0_i32 = arith.constant 0 : i32
    %c0_i32_0 = arith.constant 0 : i32
    %c0_i32_1 = arith.constant 0 : i32
    %c0_i32_2 = arith.constant 0 : i32
    return %c0_i32, %c0_i32_0, %c0_i32_1 : i32, i32, i32
  }
  func.func @transform_9(%arg0: i32) -> (i32, i32, i32) {
    %c0_i32 = arith.constant 0 : i32
    %c0_i32_0 = arith.constant 0 : i32
    %c0_i32_1 = arith.constant 0 : i32
    %c0_i32_2 = arith.constant 0 : i32
    return %c0_i32, %c0_i32_0, %c0_i32_1 : i32, i32, i32
  }
  func.func @transform_10(%arg0: i32) -> (i32, i32, i32) {
    %c0_i32 = arith.constant 0 : i32
    %c0_i32_0 = arith.constant 0 : i32
    %c0_i32_1 = arith.constant 0 : i32
    %c0_i32_2 = arith.constant 0 : i32
    return %c0_i32, %c0_i32_0, %c0_i32_1 : i32, i32, i32
  }
  func.func @transform_11(%arg0: i32) -> (i32, i32) {
    %c0_i32 = arith.constant 0 : i32
    %c0_i32_0 = arith.constant 0 : i32
    %c0_i32_1 = arith.constant 0 : i32
    return %c0_i32, %c0_i32_0 : i32, i32
  }
  func.func @transform_12(%arg0: i32) -> (i32, i32) {
    %c0_i32 = arith.constant 0 : i32
    %c0_i32_0 = arith.constant 0 : i32
    %c0_i32_1 = arith.constant 0 : i32
    return %c0_i32, %c0_i32_0 : i32, i32
  }
  func.func @transform_13(%arg0: i32) -> (i32, i32, i32) {
    %c0_i32 = arith.constant 0 : i32
    %c0_i32_0 = arith.constant 0 : i32
    %c0_i32_1 = arith.constant 0 : i32
    return %arg0, %c0_i32, %c0_i32_0 : i32, i32, i32
  }
}

</mosaic_0001>

<bundles_post_ra>
// kernel: tpu_custom_call.1
= control target key start
LH: loop header
LB: loop body
LE: loop exit
PB: predicated region body
PF: predicated region fallthrough
CT: control target
= control target key end

     0   :  { %s3066_s0 = inlined_call_operand.hbm [shape: f32[2,8,64], index: 0, kind: input, shape index: {}]   ;;  %s3067_s1 = inlined_call_operand.hbm [shape: f32[2,1,8], index: 1, kind: input, shape index: {}]   ;;  %s3068_s2 = inlined_call_operand.hbm [shape: f32[2,1,64], index: 2, kind: input, shape index: {}]   ;;  %s3069_s3 = inlined_call_operand.hbm [shape: f32[2,64], index: 3, kind: input, shape index: {}]   ;;  %s3070_s4 = inlined_call_operand.vmem [shape: bf16[2,64,192], index: 4, kind: input, shape index: {}]   ;;  %s3071_s5 = inlined_call_operand.vmem [shape: bf16[2,64,64], index: 5, kind: input, shape index: {}]   ;;  %s3072_s6 = inlined_call_operand.hbm [shape: bf16[2,64,128], index: 6, kind: input, shape index: {}]   ;;  %s3073_s7 = inlined_call_operand.vmem [shape: bf16[2,128,64], index: 7, kind: input, shape index: {}]   ;;  %s3074_s8 = inlined_call_operand.hbm [shape: f32[2,1,192], index: 8, kind: input, shape index: {}]   ;;  %s3075_s9 = inlined_call_operand.vmem [shape: f32[2,1,128], index: 9, kind: input, shape index: {}]   ;;  %s3076_s10 = inlined_call_operand.vmem [shape: f32[2,6,64], index: 10, kind: input, shape index: {}]   ;;  %s3077_s11 = inlined_call_operand.vmem [shape: bf16[64,128], index: 11, kind: input, shape index: {}]   ;;  %s3078_s12 = inlined_call_operand.vmem [shape: f32[1,128], index: 12, kind: input, shape index: {}]   ;;  %s3079_s13 = inlined_call_operand.hbm [shape: f32[2,1,128], index: 13, kind: output, shape index: {}]  }
   0x1   :  { %3091 = sst [smem:[#allocation25_spill]] %s3067_s1 }
   0x2   :  { %3092 = sst [smem:[#allocation26_spill]] %s3069_s3 }
   0x3   :  { %3093 = sst [smem:[#allocation27_spill]] %s3072_s6 }
   0x4   :  { %3094 = sst [smem:[#allocation28_spill]] %s3075_s9 }
   0x5   :  { %3095 = sst [smem:[#allocation29_spill]] %s3077_s11 }
   0x6   :  { %3096 = sst [smem:[#allocation30_spill]] %s3078_s12 }
   0x7   :  { %3097 = sst [smem:[#allocation31_spill]] %s3079_s13 }
   0x8   :  { %18 = vsyncpa [#allocation3], 0 }
   0x9   :  { %20 = vsyncpa [#allocation3 + $0x1], 0 }
   0xa   :  { %21 = vsyncpa [#allocation6], 0 }
   0xb   :  { %23 = vsyncpa [#allocation6 + $0x1], 0 }
   0xc   :  { %24 = vsyncpa [#allocation9], 0 }
   0xd   :  { %25 = vsyncpa [#allocation12], 0 }
   0xe   :  { %26 = vsyncpa [#allocation4], 0 }
   0xf   :  { %28 = vsyncpa [#allocation4 + $0x1], 0  ;;  %s2560_s25 = smov 0   ;;  %s2562_s26 = smov 0  }
  0x10   :  { %s2564_s27 = smov 0   ;;  %s2566_s28 = smov 0  }
  0x11 LB: > { %3098 = sst [smem:[#allocation19_spill]] %s2465_s25  ;;  %s2581_s29 = sadd.s32 4294967295, %s2477_s28   ;;  %s2477_s28 = sphi %s2566_s28, %s3126_s28   ;;  %s2473_s27 = sphi %s2564_s27, %s3128_s27   ;;  %s2469_s26 = sphi %s2562_s26, %s3130_s26   ;;  %s2465_s25 = sphi %s2560_s25, %s3129_s25  }
  0x12   : > { %3099 = sst [smem:[#allocation20_spill]] %s2473_s27  ;;  %s1756_s30 = sadd.s32 4294967294, %s2477_s28  }
  0x13   : > { %p54_p0 = scmp.ne.s32.totalorder %s2469_s26, %s2465_s25  ;;  %p3090_p1 = scmp.eq.s32.totalorder %s2581_s29, 0 }
  0x14   : > { %p340_p2 = scmp.eq.s32.totalorder %s2581_s29, 1  ;;  %p346_p3 = scmp.eq.s32.totalorder %s1756_s30, 1 }
  0x15   : > { %p2590_p4 = por %p3090_p1, %p54_p0  ;;  %p1757_p5 = scmp.ge.s32.totalorder %s2477_s28, 1 }
  0x16   : > { %p2595_p6 = por %p346_p3, %p54_p0  ;;  %p353_p7 = scmp.lt.s32.totalorder %s2477_s28, 3 }
  0x17   : > { %s3103_s3 = sld [smem:[#allocation26_spill]]  ;;  %s2479_s20 = smov [#allocation8]  }
  0x18   : > { %s3101_s15 = scalar_select %p2595_p6, 1, 0 }
  0x19   : > { %p2603_p8 = pnand %p1757_p5, %p353_p7  ;;  %s367_s21 = sshll.u32 %s2479_s20, 4  ;;  %s368_s21 = int_to_ptr.vmem [resolvable:$true] %s367_s21 }
  0x1a   : > { %3102 = sst [smem:[#allocation21_spill]] %s3101_s15  ;;  %s2617_s23 = sadd.s32 1, %s2477_s28  }
  0x1b   : > { %p2104_p10 = pneg %p2603_p8  ;;  %3106 = sst [smem:[#allocation22_spill]] %s2617_s23 }
  0x1c   : > { %s41_s24 = sadd.s32 1, %s2473_s27  ;;  %s38_s30 = ssub.s32 %s2477_s28, %s2617_s23 }
  0x1d   : > { %s365_s18 = sshll.u32 %s3103_s3, 4  ;;  %p2612_p11 = pnand %p2104_p10, %p3090_p1  ;;  %s366_s18 = int_to_ptr.hbm [resolvable:$true] %s365_s18 }
  0x1e   : > { %p39_p12 = scmp.eq.s32.totalorder %s38_s30, 0  ;;  %p48_p13 = scmp.ne.s32.totalorder %s2473_s27, %s2469_s26 }
  0x1f   : > { %2107 = dma.hbm_to_vmem [thread:$0]  (!%p2612_p11), %s366_s18, 32, %s368_s21, [#allocation9]  }
  0x20   : > { %p49_p0 = scmp.eq.s32.totalorder %s2477_s28, 0  ;;  %p2131_p3 = scmp.lt.s32.totalorder %s2477_s28, 2 }
  0x21   : > { %s2629_s16 = scalar_select %p39_p12, %s2473_s27, %s41_s24  }
  0x22   : > { %p50_p5 = por %p49_p0, %p48_p13  ;;  %p2633_p7 = por %p340_p2, %p48_p13 }
  0x23   : > { %3107 = sst [smem:[#allocation23_spill]] %s2629_s16  ;;  %s2638_s20 = sand.u32 1, %s2473_s27  }
  0x24   : > { %s3108_s17 = scalar_select %p2633_p7, 1, 0 }
  0x25   : > { %s446_s3 = sand.u32 1, %s2477_s28   ;;  %p2641_p10 = pnand %p2131_p3, %p50_p5 }
  0x26   : > { %3109 = sst [smem:[#allocation24_spill]] %s3108_s17  ;;  %s449_s16 = scalar_lea.vmem [#allocation5], %s2638_s20 }
  0x27   : > { %s3111_s1 = sld [smem:[#allocation25_spill]]  ;;  %s456_s15 = sshll.u32 %s449_s16, 4  ;;  %s457_s15 = int_to_ptr.vmem [resolvable:$true] %s456_s15 }
  0x28   : > { %s3112_s6 = sld [smem:[#allocation27_spill]]  ;;  %s2653_s13 = scalar_lea.sflag [#allocation6], %s446_s3 }
  0x29   : > { %p2253_p12 = pneg %p2641_p10 }
  0x2d   : > { %s452_s24 = scalar_lea.hbm %s3111_s1, %s2477_s28  ;;  %s2256_s16 = scalar_lea.hbm %s3111_s1, 2 }
  0x2e   : > { %s454_s30 = sshll.u32 %s452_s24, 4  ;;  %s382_s17 = sshll.u32 %s3112_s6, 4  ;;  %s455_s30 = int_to_ptr.hbm [resolvable:$true] %s454_s30  ;;  %s383_s17 = int_to_ptr.hbm [resolvable:$true] %s382_s17 }
  0x2f   : > { %s2249_s12 = sshra.s32 %s455_s30, 4  ;;  %s2250_s12 = int_to_ptr.hbm [resolvable:$true] %s2249_s12 }
  0x30   : > { %s2251_s11 = scalar_lea.hbm %s2250_s12, 1  ;;  %p2257_p3 = scmp.lt.s32.totalorder %s2250_s12, %s3111_s1 }
  0x31   : > { %p2252_p2 = scmp.ne.s32.totalorder %s2250_s12, %s2251_s11  ;;  %p2258_p5 = scmp.lt.s32.totalorder %s2256_s16, %s2251_s11 }
  0x33   : > { %p2254_p13 = pnand %p2253_p12, %p2252_p2  ;;  %p2259_p9 = por %p2258_p5, %p2257_p3 }
  0x35   : > { %p2255_p0 = pneg %p2254_p13 }
  0x37   : > { %p2260_p1 = pnand %p2259_p9, %p2255_p0 }
  0x39   : > { %2263 = shalt.err (!%p2260_p1)
}
  0x3a   : > { %2120 = dma.hbm_to_vmem [thread:$0]  (!%p2641_p10), %s455_s30, 16, %s457_s15, %s2653_s13  }
  0x3b   : > { %s2480_s3 = smov [#allocation10]   ;;  %s2481_s27 = smov 64  }
  0x3c   : > { %s384_s25 = sshll.u32 %s2480_s3, 4  ;;  %s2482_s18 = smov 4   ;;  %s385_s25 = int_to_ptr.vmem [resolvable:$true] %s384_s25 }
  0x3d   : > { %2110 = dma.hbm_to_vmem [thread:$0]  (!%p2612_p11), %s383_s17, 1024, %s385_s25, [#allocation9], %s2481_s27, %s2481_s27, %s2482_s18  }
  0x3e   : > { %s399_s12 = sshll.u32 %s3074_s8, 4  ;;  %s2483_s21 = smov [#allocation11]   ;;  %s400_s12 = int_to_ptr.hbm [resolvable:$true] %s399_s12 }
  0x3f   : > { %s401_s16 = sshll.u32 %s2483_s21, 4  ;;  %s2484_s15 = smov 32   ;;  %s402_s16 = int_to_ptr.vmem [resolvable:$true] %s401_s16 }
  0x40   : > { %s2485_s30 = smov 2   ;;  %s1762_s24 = sshll.u32 %s2638_s20, 3 }
  0x41   : > { %2113 = dma.hbm_to_vmem [thread:$0]  (!%p2612_p11), %s400_s12, 64, %s402_s16, [#allocation12], %s2484_s15, %s2484_s15, %s2485_s30  }
  0x42   : > { %s1763_s3 = sshll.u32 %s2477_s28, 3  ;;  %s431_s27 = scalar_lea.vmem [#allocation2], %s1762_s24 }
  0x43   : > { %s435_s17 = scalar_lea.hbm %s3066_s0, %s1763_s3  ;;  %s439_s18 = sshll.u32 %s431_s27, 4  ;;  %s440_s18 = int_to_ptr.vmem [resolvable:$true] %s439_s18 }
  0x44   : > { %s437_s25 = sshll.u32 %s435_s17, 4  ;;  %s428_s9 = scalar_lea.sflag [#allocation3], %s2638_s20  ;;  %s438_s25 = int_to_ptr.hbm [resolvable:$true] %s437_s25 }
  0x45   : > { %s2339_s11 = sshra.s32 %s438_s25, 4  ;;  %s2346_s16 = scalar_lea.hbm %s3066_s0, 16  ;;  %s2340_s11 = int_to_ptr.hbm [resolvable:$true] %s2339_s11 }
  0x46   : > { %s2341_s21 = scalar_lea.hbm %s2340_s11, 8  ;;  %p2347_p2 = scmp.lt.s32.totalorder %s2340_s11, %s3066_s0 }
  0x47   : > { %p2342_p1 = scmp.ne.s32.totalorder %s2340_s11, %s2341_s21  ;;  %p2348_p13 = scmp.lt.s32.totalorder %s2346_s16, %s2341_s21 }
  0x49   : > { %p2344_p9 = pnand %p2342_p1, %p2253_p12  ;;  %p2349_p0 = por %p2348_p13, %p2347_p2 }
  0x4b   : > { %p2345_p11 = pneg %p2344_p9 }
  0x4d   : > { %p2350_p3 = pnand %p2349_p0, %p2345_p11 }
  0x4f   : > { %2353 = shalt.err (!%p2350_p3)
}
  0x50   : > { %2117 = dma.hbm_to_vmem [thread:$0]  (!%p2641_p10), %s438_s25, 128, %s440_s18, %s428_s9  }
  0x51   : > { %s469_s24 = scalar_lea.hbm %s3068_s2, %s2477_s28  ;;  %s466_s17 = scalar_lea.vmem [#allocation7], %s2638_s20 }
  0x52   : > { %s471_s3 = sshll.u32 %s469_s24, 4  ;;  %s473_s27 = sshll.u32 %s466_s17, 4  ;;  %s472_s3 = int_to_ptr.hbm [resolvable:$true] %s471_s3  ;;  %s474_s27 = int_to_ptr.vmem [resolvable:$true] %s473_s27 }
  0x53   : > { %s2369_s11 = sshra.s32 %s472_s3, 4  ;;  %s2376_s25 = scalar_lea.hbm %s3068_s2, 2  ;;  %s2370_s11 = int_to_ptr.hbm [resolvable:$true] %s2369_s11 }
  0x54   : > { %s2371_s21 = scalar_lea.hbm %s2370_s11, 1  ;;  %p2377_p11 = scmp.lt.s32.totalorder %s2370_s11, %s3068_s2 }
  0x55   : > { %p2372_p5 = scmp.ne.s32.totalorder %s2370_s11, %s2371_s21  ;;  %p2378_p2 = scmp.lt.s32.totalorder %s2376_s25, %s2371_s21 }
  0x57   : > { %p2374_p1 = pnand %p2372_p5, %p2253_p12  ;;  %p2379_p13 = por %p2378_p2, %p2377_p11 }
  0x59   : > { %p2375_p9 = pneg %p2374_p1 }
  0x5b   : > { %p2380_p0 = pnand %p2379_p13, %p2375_p9 }
  0x5d   : > { %2383 = shalt.err (!%p2380_p0)
}
  0x5e   : > { %2123 = dma.hbm_to_vmem [thread:$0]  (!%p2641_p10), %s472_s3, 16, %s474_s27, %s2653_s13  }
  0x5f   : > { %482 = sbr.rel (%p2603_p8) target bundleno = 4274 (0x10b2), region = 72  ;;  %s2713_s20 = sand.u32 (!%p2603_p8), 1, %s2469_s26  }
  0x60   : > { %s1765_s16 = sshll.u32 (!%p2603_p8), %s2713_s20, 3  ;;  %s485_s1 = scalar_lea.sflag (!%p2603_p8), [#allocation3], %s2713_s20 }
  0x61   : > { %s488_s6 = scalar_lea.vmem (!%p2603_p8), [#allocation2], %s1765_s16 }
  0x64   : > { %2444 = dma.done.wait (%p2590_p4), %s485_s1, 128  }
  0x65   : > { %2446 = vsyncadd (%p2590_p4), %s485_s1, 4294967168  ;;  %s494_s13 = sand.u32 1, %s2581_s29   ;;  %s497_s23 = scalar_lea.vmem [#allocation5], %s2713_s20 }
  0x66   : > { %s495_s19 = scalar_lea.sflag [#allocation6], %s494_s13 }
  0x67   : > { %2448 = dma.done.wait (%p2590_p4), %s495_s19, 32  }
  0x68   : > { %2450 = vsyncadd (%p2590_p4), %s495_s19, 4294967264  ;;  %s506_s15 = scalar_lea.vmem [#allocation7], %s2713_s20  ;;  %p3113_p8 = scmp.eq.s32.totalorder %s2581_s29, 0 }
  0x6a   : > { %2452 = dma.done.wait (%p3113_p8), [#allocation9], 1056   ;;  %p3114_p10 = pmov %p3113_p8 }
  0x6b   : > { %p3115_p12 = pmov %p3113_p8 }
  0x6c   : > { %2454 = vsyncadd (%p3114_p10), [#allocation9], 4294966240 }
  0x6d   : > { %2456 = dma.done.wait (%p3115_p12), [#allocation12], 64   ;;  %p3116_p3 = pmov %p3113_p8 }
  0x6e   : > { %vm576_vm0 = vcmask 523264   ;;  %v573_v0 = vld [vmem:[%s488_s6] sm:$0xff]  ;;  %v2486_v2 = vmov 64.0   ;;  %v1795_v14 = vld [vmem:[%s3070_s4 + $0x30] sm:$0xf]  ;;  %vm775_vm5 = vcmask 1043456  }
  0x6f   : > { %2458 = vsyncadd (%p3116_p3), [#allocation12], 4294967232  ;;  %v577_v1 = vsel %vm576_vm0, %v573_v0, 0.0  ;;  %2183 = vrcp.f32 %v2486_v2  ;;  %v2039_v15 = vld [vmem:[%s3070_s4 + $0x34] sm:$0xf0]  ;;  %s2487_s1 = smov 96  }
  0x70   : > { %578 = vadd.xlane.f32.xlu0 %v577_v1  ;;  %v2038_v16 = vld [vmem:[%s3070_s4 + $0x34] sm:$0xf]  ;;  %v1796_v17 = vor.u32 %v2039_v15, %v1795_v14  ;;  %v1797_v18 = vld [vmem:[%s3070_s4 + $0x38] sm:$0xf0]  ;;  %v1787_v20 = vld [vmem:[%s3070_s4 + $0x20] sm:$0xf] }
  0x71   : > { %v1800_v19 = vor.u32 %v2038_v16, %v1797_v18  ;;  %v2037_v21 = vld [vmem:[%s3070_s4 + $0x24] sm:$0xf0]  ;;  %v2036_v22 = vld [vmem:[%s3070_s4 + $0x24] sm:$0xf]  ;;  %v1789_v24 = vld [vmem:[%s3070_s4 + $0x28] sm:$0xf0] }
  0x72   : > { %709 = vmatpush.bf16.msra.mxu0 %v1796_v17  ;;  %v1788_v23 = vor.u32 %v2037_v21, %v1787_v20  ;;  %v1792_v25 = vor.u32 %v2036_v22, %v1789_v24  ;;  %v1779_v26 = vld [vmem:[%s3070_s4 + $0x10] sm:$0xf]  ;;  %v2035_v27 = vld [vmem:[%s3070_s4 + $0x14] sm:$0xf0]  ;;  %v2034_v28 = vld [vmem:[%s3070_s4 + $0x14] sm:$0xf] }
  0x73   : > { %722 = vmatpush.bf16.msra.mxu1 %v1800_v19  ;;  %v1780_v29 = vor.u32 %v2035_v27, %v1779_v26  ;;  %v1781_v30 = vld [vmem:[%s3070_s4 + $0x18] sm:$0xf0]  ;;  %v1771_v32 = vld [vmem:[%s3070_s4] sm:$0xf]  ;;  %v2033_v33 = vld [vmem:[%s3070_s4 + $0x4] sm:$0xf0] }
  0x74   : > { %v1784_v31 = vor.u32 %v2034_v28, %v1781_v30  ;;  %v2032_v34 = vld [vmem:[%s3070_s4 + $0x4] sm:$0xf]  ;;  %v1772_v35 = vor.u32 %v2033_v33, %v1771_v32  ;;  %v1773_v36 = vld [vmem:[%s3070_s4 + $0x8] sm:$0xf0]  ;;  %v2179_v47 = vld [vmem:[#allocation8] ss:$0 sm:$0xff] }
  0x75   : > { %v2184_v3 = vpop.eup %2183  ;;  %v1776_v37 = vor.u32 %v2032_v34, %v1773_v36  ;;  %v2180_v50 = vld [vmem:[#allocation8 + $0x1] ss:$0 sm:$0xff]  ;;  %v653_v54 = vld [vmem:[#allocation11] sm:$0x3]  ;;  %s2488_s6 = smov 32   ;;  %s2489_s13 = smov 64  }
  0x76   : > { %v581_v4 = vmul.f32 64.0, %v2184_v3  ;;  %vm585_vm1 = vweird.f32 %v2184_v3  ;;  %710 = vmatpush.bf16.msra.mxu0 %v1788_v23  ;;  %v658_v55 = vperm.slane %v653_v54, 0  ;;  %v659_v56 = vperm.slane %v653_v54, 1  ;;  %v2041_v30 = vld [vmem:[%s3071_s5 + $0x8] sm:$0xff]  ;;  %s3117_s25 = sld [smem:[#allocation28_spill]]  ;;  %s571_s3 = scalar_lea.vmem [#allocation13], %s2713_s20 }
  0x77   : > { %723 = vmatpush.bf16.msra.mxu1 %v1792_v25  ;;  %vm738_vm6 = vcmask 261120   ;;  %vm758_vm7 = vcmask 64512   ;;  %s3119_s21 = sld [smem:[#allocation29_spill]]  ;;  %s1624_s17 = sshll.u32 %s571_s3, 4  ;;  %s1625_s17 = int_to_ptr.vmem [resolvable:$true] %s1624_s17 }
  0x78   : > { %v582_v5 = vsub.f32 1.0, %v581_v4  ;;  %s3121_s14 = sld [smem:[#allocation31_spill]]  ;;  %s1614_s11 = scalar_lea.sflag [#allocation4], %s2713_s20 }
  0x7a   : > { %v583_v6 = vmul.f32 %v2184_v3, %v582_v5  ;;  %711 = vmatpush.bf16.msra.mxu0 %v1780_v29 }
  0x7b   : > { %724 = vmatpush.bf16.msra.mxu1 %v1784_v31 }
  0x7c   : > { %v584_v7 = vadd.f32 %v2184_v3, %v583_v6  ;;  %s3118_s18 = smov %s3117_s25 }
  0x7e   : > { %v2737_v8 = vsel %vm585_vm1, %v2184_v3, %v584_v7  ;;  %712 = vmatpush.bf16.msra.mxu0 %v1772_v35  ;;  %v610_v7 = vld [vmem:[%s497_s23] sm:$0x1]  ;;  %s3120_s23 = sld [smem:[#allocation30_spill]]  ;;  %s1622_s24 = scalar_lea.hbm %s3121_s14, %s2581_s29 }
  0x7f   : > { %725 = vmatpush.bf16.msra.mxu1 %v1776_v37  ;;  %s1626_s27 = sshll.u32 %s1622_s24, 4  ;;  %s2419_s29 = scalar_lea.hbm %s3121_s14, 2  ;;  %s1627_s27 = int_to_ptr.hbm [resolvable:$true] %s1626_s27 }
  0x80   : > { %s2413_s22 = sshra.s32 %s1627_s27, 4  ;;  %s2414_s22 = int_to_ptr.hbm [resolvable:$true] %s2413_s22 }
  0x81   : > { %s2415_s12 = scalar_lea.hbm %s2414_s22, 1  ;;  %p2420_p9 = scmp.lt.s32.totalorder %s2414_s22, %s3121_s14 }
  0x82   : > { %p2416_p4 = scmp.ne.s32.totalorder %s2414_s22, %s2415_s12  ;;  %p2421_p11 = scmp.lt.s32.totalorder %s2419_s29, %s2415_s12 }
  0x83   : > { %900 = vmatpush.bf16.msrb.mxu1 %v2041_v30  ;;  %v2048_v30 = vld [vmem:[%s3073_s7] sm:$0xff] }
  0x84   : > { %p2417_p5 = pnand %p2416_p4, %p2633_p7  ;;  %p2422_p2 = por %p2421_p11, %p2420_p9 }
  0x86   : > { %p2418_p1 = pneg %p2417_p5 }
  0x88   : > { %p2423_p13 = pnand %p2422_p2, %p2418_p1 }
  0xe3   : > { %v579_v9 = vpop.xlane.xlu0 %578 }
  0xe4   : > { %v587_v10 = vmul.f32 %v2737_v8, %v579_v9  ;;  %v611_v9 = vsub.f32 1.0, %v610_v7 }
  0xe6   : > { %v588_v11 = vsub.f32 %v573_v0, %v587_v10  ;;  %v612_v10 = vmul.f32 -10000.0, %v611_v9 }
  0xe8   : > { %v589_v12 = vmul.f32 %v588_v11, %v588_v11 }
  0xea   : > { %v590_v13 = vsel %vm576_vm0, %v589_v12, 0.0 }
  0xeb   : > { %591 = vadd.xlane.f32.xlu0 %v590_v13 }
 0x15e   : > { %v592_v38 = vpop.xlane.xlu0 %591 }
 0x15f   : > { %v593_v39 = vmul.f32 %v592_v38, %v2737_v8 }
 0x161   : > { %v594_v40 = vadd.f32 1e-12, %v593_v39 }
 0x163   : > { %2185 = vrsqrt.f32 %v594_v40  ;;  %vm601_vm3 = vweird.f32 %v594_v40 }
 0x169   : > { %v2186_v41 = vpop.eup %2185 }
 0x16a   : > { %v596_v42 = vmul.f32 %v2186_v41, %v594_v40  ;;  %vm602_vm2 = vweird.f32 %v2186_v41 }
 0x16b   : > { %vm603_vm4 = vmor %vm601_vm3, %vm602_vm2 }
 0x16c   : > { %v597_v43 = vmul.f32 %v2186_v41, %v596_v42  ;;  %v2043_v42 = vld [vmem:[%s3071_s5 + $0x18] sm:$0xff] }
 0x16e   : > { %v598_v44 = vmul.f32 0.5, %v597_v43  ;;  %v2042_v43 = vld [vmem:[%s3071_s5 + $0x10] sm:$0xff] }
 0x170   : > { %v599_v45 = vsub.f32 1.5, %v598_v44 }
 0x172   : > { %v600_v46 = vmul.f32 %v2186_v41, %v599_v45 }
 0x174   : > { %v604_v48 = vsel %vm603_vm4, %v2186_v41, %v600_v46  ;;  %v2040_v41 = vld [vmem:[%s3071_s5] sm:$0xff] }
 0x175   : > { %v605_v49 = vmul.f32 %v604_v48, %v588_v11  ;;  %v2806_v11 = vperm.slane %v612_v10, 0  ;;  %901 = vmatpush.bf16.msrb.mxu1 %v2040_v41 }
 0x177   : > { %v607_v51 = vmul.f32 %v2179_v47, %v605_v49 }
 0x179   : > { %v2790_v52 = vadd.f32 %v2180_v50, %v607_v51 }
 0x17b   : > { %v656_v53 = vpack.c.bf16 %v2790_v52, %v2790_v52 }
 0x17d   : > { %1801 = vmatmul.msk.bf16.vlgmr.msra.gmra.mxu0 %vm576_vm0, %v656_v53  ;;  %1802 = vmatmul.msk.bf16.vlgmr.msra.gmra.mxu1 %vm576_vm0, %v656_v53  ;;  %v2835_v53 = vld [vmem:[%s3076_s10] sm:$0x3f] }
 0x17e   : > { %v907_v54 = vperm.slane %v2835_v53, 0 }
 0x1fa   : > { %v714_v57 = vpop.f32.mrf.mxu0  ;;  %v727_v58 = vpop.f32.mrf.mxu1 }
 0x1fb   : > { %v715_v59 = vadd.f32 %v714_v57, %v658_v55  ;;  %v728_v60 = vadd.f32 %v727_v58, %v659_v56 }
 0x1fd   : > { %v731_v61 = vpack.c.bf16 %v715_v59, %v715_v59  ;;  %v771_v62 = vpack.c.bf16 %v728_v60, %v728_v60 }
 0x1ff   : > { %793 = vrot.lane.b32.xlu2 %v731_v61, %s2487_s1  ;;  %795 = vrot.lane.b32.xlu1 %v731_v61, %s2488_s6  ;;  %v777_v63 = vsel %vm775_vm5, %v771_v62, 0 }
 0x200   : > { %786 = vmatpush.bf16.msrb.mxu0 %v777_v63 }
 0x202   : > { %v716_v0 = vpop.f32.mrf.mxu0  ;;  %v729_v1 = vpop.f32.mrf.mxu1 }
 0x204   : > { %872 = vmatpush.bf16.msra.mxu0 %v2043_v42 }
 0x207   : > { %736 = vrot.lane.b32.xlu1 %v731_v61, %s2489_s13 }
 0x208   : > { %873 = vmatpush.bf16.msra.mxu0 %v2042_v43 }
 0x259   : > { %v794_v4 = vpop.permute.xlu2 %793 }
 0x271   : > { %v796_v2 = vpop.permute.xlu1 %795 }
 0x272   : > { %v801_v3 = vsel %vm738_vm6, %v796_v2, 0  ;;  %v2047_v2 = vld [vmem:[#allocation10 + $0x18] sm:$0xff] }
 0x273   : > { %810 = vmatpush.bf16.xpose.msra.mxu3 %v801_v3  ;;  %v2046_v3 = vld [vmem:[#allocation10 + $0x10] sm:$0xff] }
 0x279   : > { %v737_v5 = vpop.permute.xlu1 %736 }
 0x27a   : > { %1805 = vmatmul.msk.bf16.vlgmr.msra.gmra.mxu3 %vm738_vm6, %v794_v4  ;;  %v743_v6 = vsel %vm738_vm6, %v737_v5, 0  ;;  %v2045_v4 = vld [vmem:[#allocation10 + $0x8] sm:$0xff]  ;;  %v2044_v5 = vld [vmem:[#allocation10] sm:$0xff] }
 0x27b   : > { %752 = vmatpush.bf16.xpose.msra.mxu2 %v743_v6  ;;  %971 = vmatpush.bf16.msrb.mxu3 %v2047_v2  ;;  %v2060_v2 = vld [vmem:[%s3070_s4 + $0x64] sm:$0xf] }
 0x27f   : > { %972 = vmatpush.bf16.msrb.mxu3 %v2046_v3 }
 0x282   : > { %1803 = vmatmul.msk.bf16.vlgmr.msra.gmra.mxu2 %vm738_vm6, %v731_v61 }
 0x283   : > { %973 = vmatpush.bf16.msrb.mxu3 %v2045_v4  ;;  %v1928_v4 = vld [vmem:[%s3070_s4 + $0x68] sm:$0xf0] }
 0x287   : > { %974 = vmatpush.bf16.msrb.mxu3 %v2044_v5  ;;  %v1931_v5 = vor.u32 %v2060_v2, %v1928_v4 }
 0x2fd   : > { %v812_v12 = vpop.f32.mrf.mxu3 }
 0x2fe   : > { %v813_v13 = vadd.f32 %v812_v12, %v2806_v11 }
 0x300   : > { %v816_v14 = vsel %vm758_vm7, %v813_v13, -inf }
 0x301   : > { %817 = vmax.xlane.f32.xlu2 %v816_v14 }
 0x305   : > { %v754_v15 = vpop.f32.mrf.mxu2  ;;  %v814_v16 = vpop.f32.mrf.mxu3 }
 0x306   : > { %v755_v17 = vadd.f32 %v754_v15, %v2806_v11 }
 0x308   : > { %v759_v18 = vsel %vm758_vm7, %v755_v17, -inf }
 0x309   : > { %760 = vmax.xlane.f32.xlu0 %v759_v18 }
 0x30d   : > { %v756_v19 = vpop.f32.mrf.mxu2 }
 0x374   : > { %v818_v20 = vpop.xlane.xlu2 %817 }
 0x375   : > { %v819_v21 = vsub.f32 %v813_v13, %v818_v20  ;;  %v934_v20 = vperm.slane %v2835_v53, 2 }
 0x377   : > { %v820_v22 = vmul.f32 1.442695, %v819_v21 }
 0x379   : > { %2187 = vpow2.f32 %v820_v22 }
 0x37c   : > { %v761_v23 = vpop.xlane.xlu0 %760 }
 0x37d   : > { %v762_v24 = vsub.f32 %v755_v17, %v761_v23  ;;  %v932_v17 = vperm.slane %v2835_v53, 1 }
 0x37f   : > { %v2188_v25 = vpop.eup %2187  ;;  %v763_v26 = vmul.f32 1.442695, %v762_v24  ;;  %v2054_v24 = vld [vmem:[%s3073_s7 + $0x30] sm:$0xff] }
 0x380   : > { %v822_v27 = vsel %vm758_vm7, %v2188_v25, 0.0 }
 0x381   : > { %2189 = vpow2.f32 %v763_v26  ;;  %823 = vadd.xlane.f32.xlu1 %v822_v27  ;;  %v2052_v26 = vld [vmem:[%s3073_s7 + $0x20] sm:$0xff]  ;;  %v2051_v27 = vld [vmem:[%s3073_s7 + $0x18] sm:$0xff] }
 0x387   : > { %v2190_v28 = vpop.eup %2189 }
 0x388   : > { %v765_v29 = vsel %vm758_vm7, %v2190_v28, 0.0 }
 0x389   : > { %766 = vadd.xlane.f32.xlu0 %v765_v29  ;;  %v2049_v29 = vld [vmem:[%s3073_s7 + $0x8] sm:$0xff] }
 0x39d   : > { %829 = vrot.lane.b32.xlu0 %v771_v62, %s2487_s1 }
 0x3f4   : > { %v824_v32 = vpop.xlane.xlu1 %823 }
 0x3fc   : > { %v767_v31 = vpop.xlane.xlu0 %766 }
 0x3fd   : > { %2191 = vrcp.f32 %v767_v31  ;;  %v2181_v31 = vld [vmem:[%s3117_s25] ss:$0 sm:$0xff] }
 0x3fe   : > { %2193 = vrcp.f32 %v824_v32 }
 0x403   : > { %v2192_v33 = vpop.eup %2191 }
 0x404   : > { %v769_v34 = vmul.f32 %v2192_v33, %v2190_v28  ;;  %v2194_v36 = vpop.eup %2193  ;;  %v2050_v28 = vld [vmem:[%s3073_s7 + $0x10] sm:$0xff] }
 0x405   : > { %v826_v37 = vmul.f32 %v2194_v36, %v2188_v25  ;;  %v2053_v25 = vld [vmem:[%s3073_s7 + $0x28] sm:$0xff] }
 0x406   : > { %v770_v35 = vpack.c.bf16 %v769_v34, %v769_v34 }
 0x407   : > { %v827_v40 = vpack.c.bf16 %v826_v37, %v826_v37 }
 0x408   : > { %1804 = vmatmul.msk.bf16.vlgmr.msrb.gmra.mxu0 %vm758_vm7, %v770_v35 }
 0x40f   : > { %v830_v38 = vpop.permute.xlu0 %829 }
 0x410   : > { %v835_v39 = vsel %vm775_vm5, %v830_v38, 0 }
 0x411   : > { %844 = vmatpush.bf16.msrb.mxu2 %v835_v39 }
 0x414   : > { %1806 = vmatmul.msk.bf16.vlgmr.msrb.gmra.mxu2 %vm758_vm7, %v827_v40 }
 0x485   : > { %v788_v44 = vpop.f32.mrf.mxu0 }
 0x486   : > { %v792_v45 = vpack.c.bf16 %v788_v44, %v788_v44 }
 0x488   : > { %1824 = vmatmul.msk.bf16.vlgmr.msrb.gmra.mxu1 %vm738_vm6, %v792_v45  ;;  %v990_v45 = vperm.slane %v2835_v53, 3 }
 0x48d   : > { %v790_v46 = vpop.f32.mrf.mxu0 }
 0x497   : > { %v846_v47 = vpop.f32.mrf.mxu2 }
 0x498   : > { %v850_v48 = vpack.c.bf16 %v846_v47, %v846_v47 }
 0x49a   : > { %1815 = vmatmul.msk.bf16.vlgmr.msra.gmra.mxu0 %vm738_vm6, %v850_v48 }
 0x49f   : > { %v848_v49 = vpop.f32.mrf.mxu2 }
 0x505   : > { %v903_v50 = vpop.f32.mrf.mxu1 }
 0x50d   : > { %v905_v51 = vpop.f32.mrf.mxu1 }
 0x517   : > { %v875_v55 = vpop.f32.mrf.mxu0 }
 0x518   : > { %v904_v56 = vadd.f32 %v903_v50, %v875_v55 }
 0x51a   : > { %v908_v57 = vadd.f32 %v907_v54, %v904_v56 }
 0x51c   : > { %v909_v58 = vadd.f32 %v908_v57, %v2790_v52  ;;  %v2055_v52 = vld [vmem:[%s3073_s7 + $0x38] sm:$0xff] }
 0x51d   : > { %1039 = vmatpush.bf16.msra.mxu2 %v2055_v52  ;;  %v1918_v52 = vld [vmem:[%s3070_s4 + $0x50] sm:$0xf] }
 0x51e   : > { %v910_v59 = vsel %vm576_vm0, %v909_v58, 0.0 }
 0x51f   : > { %911 = vadd.xlane.f32.xlu2 %v910_v59  ;;  %v877_v60 = vpop.f32.mrf.mxu0  ;;  %v2063_v59 = vld [vmem:[%s3070_s4 + $0x74] sm:$0xf0] }
 0x520   : > { %v2062_v60 = vld [vmem:[%s3070_s4 + $0x74] sm:$0xf] }
 0x521   : > { %1040 = vmatpush.bf16.msra.mxu2 %v2054_v24 }
 0x525   : > { %1041 = vmatpush.bf16.msra.mxu2 %v2053_v25 }
 0x529   : > { %1042 = vmatpush.bf16.msra.mxu2 %v2052_v26 }
 0x52d   : > { %1043 = vmatpush.bf16.msra.mxu2 %v2051_v27 }
 0x531   : > { %1044 = vmatpush.bf16.msra.mxu2 %v2050_v28  ;;  %v1075_v28 = vperm.slane %v2835_v53, 4 }
 0x535   : > { %1045 = vmatpush.bf16.msra.mxu2 %v2049_v29 }
 0x539   : > { %1046 = vmatpush.bf16.msra.mxu2 %v2048_v30  ;;  %v1077_v30 = vperm.slane %v2835_v53, 5 }
 0x592   : > { %v912_v61 = vpop.xlane.xlu2 %911 }
 0x593   : > { %v913_v62 = vmul.f32 %v912_v61, %v2737_v8 }
 0x595   : > { %v914_v63 = vsub.f32 %v909_v58, %v913_v62  ;;  %v1934_v58 = vld [vmem:[%s3070_s4 + $0x70] sm:$0xf]  ;;  %v1936_v62 = vld [vmem:[%s3070_s4 + $0x78] sm:$0xf0] }
 0x596   : > { %v1935_v61 = vor.u32 %v2063_v59, %v1934_v58 }
 0x597   : > { %v915_v0 = vmul.f32 %v914_v63, %v914_v63 }
 0x598   : > { %1182 = vmatpush.bf16.msrb.mxu0 %v1935_v61 }
 0x599   : > { %v916_v1 = vsel %vm576_vm0, %v915_v0, 0.0  ;;  %v1926_v0 = vld [vmem:[%s3070_s4 + $0x60] sm:$0xf] }
 0x59a   : > { %917 = vadd.xlane.f32.xlu0 %v916_v1  ;;  %v2061_v1 = vld [vmem:[%s3070_s4 + $0x64] sm:$0xf0] }
 0x59b   : > { %v1927_v3 = vor.u32 %v2061_v1, %v1926_v0 }
 0x59d   : > { %1183 = vmatpush.bf16.msrb.mxu0 %v1927_v3 }
 0x60d   : > { %v918_v6 = vpop.xlane.xlu0 %917 }
 0x60e   : > { %v919_v7 = vmul.f32 %v918_v6, %v2737_v8  ;;  %v2059_v6 = vld [vmem:[%s3070_s4 + $0x54] sm:$0xf0] }
 0x610   : > { %v920_v9 = vadd.f32 1e-12, %v919_v7  ;;  %v2058_v7 = vld [vmem:[%s3070_s4 + $0x54] sm:$0xf] }
 0x612   : > { %2195 = vrsqrt.f32 %v920_v9  ;;  %vm927_vm9 = vweird.f32 %v920_v9 }
 0x618   : > { %v2196_v10 = vpop.eup %2195 }
 0x619   : > { %v922_v12 = vmul.f32 %v2196_v10, %v920_v9  ;;  %vm928_vm8 = vweird.f32 %v2196_v10  ;;  %v1919_v9 = vor.u32 %v2059_v6, %v1918_v52 }
 0x61a   : > { %vm929_vm10 = vmor %vm927_vm9, %vm928_vm8 }
 0x61b   : > { %v923_v13 = vmul.f32 %v2196_v10, %v922_v12  ;;  %1184 = vmatpush.bf16.msrb.mxu0 %v1919_v9 }
 0x61d   : > { %v924_v14 = vmul.f32 0.5, %v923_v13  ;;  %v1910_v13 = vld [vmem:[%s3070_s4 + $0x40] sm:$0xf] }
 0x61f   : > { %v925_v15 = vsub.f32 1.5, %v924_v14  ;;  %v2057_v14 = vld [vmem:[%s3070_s4 + $0x44] sm:$0xf0] }
 0x621   : > { %v926_v16 = vmul.f32 %v2196_v10, %v925_v15  ;;  %v2056_v15 = vld [vmem:[%s3070_s4 + $0x44] sm:$0xf] }
 0x623   : > { %v930_v18 = vsel %vm929_vm10, %v2196_v10, %v926_v16  ;;  %v1920_v10 = vld [vmem:[%s3070_s4 + $0x58] sm:$0xf0]  ;;  %v1911_v16 = vor.u32 %v2057_v14, %v1910_v13 }
 0x624   : > { %v931_v19 = vmul.f32 %v930_v18, %v914_v63  ;;  %v1939_v63 = vor.u32 %v2062_v60, %v1936_v62  ;;  %v1923_v12 = vor.u32 %v2058_v7, %v1920_v10  ;;  %v2067_v13 = vld [vmem:[%s3071_s5 + $0x38] sm:$0xff] }
 0x625   : > { %1185 = vmatpush.bf16.msrb.mxu0 %v1911_v16  ;;  %1339 = vmatpush.bf16.msrb.mxu2 %v2067_v13 }
 0x626   : > { %v933_v21 = vmul.f32 %v932_v17, %v931_v19  ;;  %1195 = vmatpush.bf16.msra.mxu1 %v1939_v63  ;;  %v1912_v17 = vld [vmem:[%s3070_s4 + $0x48] sm:$0xf0] }
 0x627   : > { %v1915_v18 = vor.u32 %v2056_v15, %v1912_v17 }
 0x628   : > { %v935_v22 = vadd.f32 %v934_v20, %v933_v21 }
 0x62a   : > { %v936_v23 = vpack.c.bf16 %v935_v22, %v935_v22  ;;  %1196 = vmatpush.bf16.msra.mxu1 %v1931_v5 }
 0x62c   : > { %1841 = vmatmul.msk.bf16.vlgmr.msrb.gmra.mxu3 %vm576_vm0, %v936_v23 }
 0x62e   : > { %1197 = vmatpush.bf16.msra.mxu1 %v1923_v12 }
 0x632   : > { %1198 = vmatpush.bf16.msra.mxu1 %v1915_v18  ;;  %v2066_v18 = vld [vmem:[%s3071_s5 + $0x30] sm:$0xff] }
 0x633   : > { %1340 = vmatpush.bf16.msrb.mxu2 %v2066_v18 }
 0x6af   : > { %v976_v32 = vpop.f32.mrf.mxu3 }
 0x6b0   : > { %v977_v33 = vadd.f32 %v2181_v31, %v976_v32 }
 0x6b2   : > { %v980_v34 = vmul.f32 %v977_v33, %v977_v33 }
 0x6b4   : > { %v981_v35 = vmul.f32 %v980_v34, %v977_v33 }
 0x6b6   : > { %v982_v36 = vmul.f32 0.044715, %v981_v35  ;;  %v1124_v35 = vld [vmem:[#allocation11 + $0x2] sm:$0x3] }
 0x6b7   : > { %v978_v37 = vpop.f32.mrf.mxu3 }
 0x6b8   : > { %v983_v38 = vadd.f32 %v982_v36, %v977_v33  ;;  %v1131_v36 = vperm.slane %v1124_v35, 0  ;;  %v1132_v37 = vperm.slane %v1124_v35, 1 }
 0x6ba   : > { %v984_v39 = vmul.f32 0.7978846, %v983_v38 }
 0x6bc   : > { %2197 = vtanh.f32 %v984_v39 }
 0x6c2   : > { %v2198_v40 = vpop.eup %2197 }
 0x6c3   : > { %v986_v41 = vadd.f32 1.0, %v2198_v40 }
 0x6c5   : > { %v987_v42 = vmul.f32 0.5, %v986_v41 }
 0x6c7   : > { %v988_v43 = vmul.f32 %v987_v42, %v977_v33 }
 0x6c9   : > { %v989_v44 = vpack.c.bf16 %v988_v43, %v988_v43 }
 0x6cb   : > { %1047 = vmatmul.bf16.vlgmr.msra.gmra.mxu2 %v989_v44 }
 0x74e   : > { %v1048_v46 = vpop.f32.mrf.mxu2 }
 0x74f   : > { %v1049_v47 = vadd.f32 %v1048_v46, %v990_v45 }
 0x751   : > { %v1052_v48 = vadd.f32 %v1049_v47, %v935_v22 }
 0x753   : > { %v1053_v49 = vsel %vm576_vm0, %v1052_v48, 0.0 }
 0x754   : > { %1054 = vadd.xlane.f32.xlu2 %v1053_v49 }
 0x756   : > { %v1050_v50 = vpop.f32.mrf.mxu2 }
 0x7c7   : > { %v1055_v51 = vpop.xlane.xlu2 %1054 }
 0x7c8   : > { %v1056_v54 = vmul.f32 %v1055_v51, %v2737_v8 }
 0x7ca   : > { %v1057_v55 = vsub.f32 %v1052_v48, %v1056_v54 }
 0x7cc   : > { %v1058_v56 = vmul.f32 %v1057_v55, %v1057_v55 }
 0x7ce   : > { %v1059_v57 = vsel %vm576_vm0, %v1058_v56, 0.0 }
 0x7cf   : > { %1060 = vadd.xlane.f32.xlu1 %v1059_v57 }
 0x842   : > { %v1061_v19 = vpop.xlane.xlu1 %1060 }
 0x843   : > { %v1062_v20 = vmul.f32 %v1061_v19, %v2737_v8  ;;  %v2065_v19 = vld [vmem:[%s3071_s5 + $0x28] sm:$0xff] }
 0x845   : > { %v1063_v21 = vadd.f32 1e-12, %v1062_v20  ;;  %v2064_v20 = vld [vmem:[%s3071_s5 + $0x20] sm:$0xff] }
 0x847   : > { %2199 = vrsqrt.f32 %v1063_v21  ;;  %vm1070_vm12 = vweird.f32 %v1063_v21 }
 0x84d   : > { %v2200_v22 = vpop.eup %2199 }
 0x84e   : > { %v1065_v23 = vmul.f32 %v2200_v22, %v1063_v21  ;;  %vm1071_vm11 = vweird.f32 %v2200_v22 }
 0x84f   : > { %vm1072_vm13 = vmor %vm1070_vm12, %vm1071_vm11 }
 0x850   : > { %v1066_v24 = vmul.f32 %v2200_v22, %v1065_v23 }
 0x852   : > { %v1067_v25 = vmul.f32 0.5, %v1066_v24 }
 0x854   : > { %v1068_v26 = vsub.f32 1.5, %v1067_v25 }
 0x856   : > { %v1069_v27 = vmul.f32 %v2200_v22, %v1068_v26 }
 0x858   : > { %v1073_v29 = vsel %vm1072_vm13, %v2200_v22, %v1069_v27 }
 0x859   : > { %v1074_v31 = vmul.f32 %v1073_v29, %v1057_v55  ;;  %v2969_v29 = vld [vmem:[%s3076_s10 + $0x8] sm:$0x3f] }
 0x85b   : > { %v1076_v32 = vmul.f32 %v1075_v28, %v1074_v31 }
 0x85d   : > { %v2928_v33 = vadd.f32 %v1077_v30, %v1076_v32  ;;  %v1374_v30 = vperm.slane %v2969_v29, 0 }
 0x85f   : > { %v1129_v34 = vpack.c.bf16 %v2928_v33, %v2928_v33 }
 0x861   : > { %1940 = vmatmul.msk.bf16.vlgmr.msrb.gmra.mxu0 %vm576_vm0, %v1129_v34  ;;  %1941 = vmatmul.msk.bf16.vlgmr.msra.gmra.mxu1 %vm576_vm0, %v1129_v34 }
 0x8de   : > { %v1187_v38 = vpop.f32.mrf.mxu0  ;;  %v1200_v39 = vpop.f32.mrf.mxu1 }
 0x8df   : > { %v1188_v40 = vadd.f32 %v1187_v38, %v1131_v36  ;;  %v1201_v41 = vadd.f32 %v1200_v39, %v1132_v37 }
 0x8e1   : > { %v1204_v42 = vpack.c.bf16 %v1188_v40, %v1188_v40  ;;  %v1239_v53 = vpack.c.bf16 %v1201_v41, %v1201_v41 }
 0x8e3   : > { %v1244_v43 = vsel %vm775_vm5, %v1239_v53, 0  ;;  %1206 = vrot.lane.b32.xlu1 %v1204_v42, %s2489_s13  ;;  %1262 = vrot.lane.b32.xlu2 %v1204_v42, %s2488_s6 }
 0x8e4   : > { %1253 = vmatpush.bf16.msra.mxu0 %v1244_v43  ;;  %v2070_v43 = vld [vmem:[#allocation10 + $0x30] sm:$0xff] }
 0x8e6   : > { %v1189_v44 = vpop.f32.mrf.mxu0  ;;  %v1202_v45 = vpop.f32.mrf.mxu1 }
 0x8e7   : > { %v2069_v44 = vld [vmem:[#allocation10 + $0x28] sm:$0xff]  ;;  %v2068_v45 = vld [vmem:[#allocation10 + $0x20] sm:$0xff] }
 0x8e8   : > { %1367 = vmatpush.bf16.msrb.mxu0 %v2065_v19 }
 0x8eb   : > { %1260 = vrot.lane.b32.xlu2 %v1204_v42, %s2487_s1 }
 0x8ec   : > { %1368 = vmatpush.bf16.msrb.mxu0 %v2064_v20 }
 0x93d   : > { %v1263_v46 = vpop.permute.xlu2 %1262 }
 0x93e   : > { %v1268_v47 = vsel %vm738_vm6, %v1263_v46, 0 }
 0x93f   : > { %1277 = vmatpush.bf16.xpose.msrb.mxu1 %v1268_v47 }
 0x945   : > { %v1261_v48 = vpop.permute.xlu2 %1260 }
 0x946   : > { %1944 = vmatmul.msk.bf16.vlgmr.msrb.gmra.mxu1 %vm738_vm6, %v1261_v48 }
 0x955   : > { %v1207_v49 = vpop.permute.xlu1 %1206 }
 0x956   : > { %v1212_v50 = vsel %vm738_vm6, %v1207_v49, 0 }
 0x957   : > { %1221 = vmatpush.bf16.xpose.msra.mxu3 %v1212_v50 }
 0x95e   : > { %1942 = vmatmul.msk.bf16.vlgmr.msra.gmra.mxu3 %vm738_vm6, %v1204_v42 }
 0x9c3   : > { %v1279_v51 = vpop.f32.mrf.mxu1 }
 0x9c4   : > { %v1280_v54 = vadd.f32 %v1279_v51, %v2806_v11 }
 0x9c6   : > { %v1283_v55 = vsel %vm758_vm7, %v1280_v54, -inf }
 0x9c7   : > { %1284 = vmax.xlane.f32.xlu1 %v1283_v55 }
 0x9cb   : > { %v1281_v56 = vpop.f32.mrf.mxu1 }
 0x9e1   : > { %v1223_v57 = vpop.f32.mrf.mxu3 }
 0x9e2   : > { %v1224_v58 = vadd.f32 %v1223_v57, %v2806_v11  ;;  %v1399_v57 = vperm.slane %v2969_v29, 1 }
 0x9e4   : > { %v1227_v59 = vsel %vm758_vm7, %v1224_v58, -inf }
 0x9e5   : > { %1228 = vmax.xlane.f32.xlu0 %v1227_v59  ;;  %v1401_v59 = vperm.slane %v2969_v29, 2 }
 0x9e9   : > { %v1225_v60 = vpop.f32.mrf.mxu3 }
 0x9f9   : > { %1296 = vrot.lane.b32.xlu0 %v1239_v53, %s2487_s1  ;;  %v2071_v53 = vld [vmem:[#allocation10 + $0x38] sm:$0xff] }
 0x9fa   : > { %1438 = vmatpush.bf16.msra.mxu1 %v2071_v53 }
 0x9fe   : > { %1439 = vmatpush.bf16.msra.mxu1 %v2070_v43 }
 0xa02   : > { %1440 = vmatpush.bf16.msra.mxu1 %v2069_v44 }
 0xa06   : > { %1441 = vmatpush.bf16.msra.mxu1 %v2068_v45 }
 0xa3a   : > { %v1285_v61 = vpop.xlane.xlu1 %1284 }
 0xa3b   : > { %v1286_v62 = vsub.f32 %v1280_v54, %v1285_v61 }
 0xa3d   : > { %v1287_v63 = vmul.f32 1.442695, %v1286_v62 }
 0xa3f   : > { %2201 = vpow2.f32 %v1287_v63 }
 0xa45   : > { %v2202_v0 = vpop.eup %2201 }
 0xa46   : > { %v1289_v1 = vsel %vm758_vm7, %v2202_v0, 0.0 }
 0xa47   : > { %1290 = vadd.xlane.f32.xlu2 %v1289_v1  ;;  %v2077_v1 = vld [vmem:[%s3073_s7 + $0x68] sm:$0xff] }
 0xa58   : > { %v1229_v2 = vpop.xlane.xlu0 %1228 }
 0xa59   : > { %v1230_v3 = vsub.f32 %v1224_v58, %v1229_v2  ;;  %v2076_v2 = vld [vmem:[%s3073_s7 + $0x60] sm:$0xff] }
 0xa5b   : > { %v1231_v4 = vmul.f32 1.442695, %v1230_v3  ;;  %v2075_v3 = vld [vmem:[%s3073_s7 + $0x58] sm:$0xff] }
 0xa5d   : > { %2203 = vpow2.f32 %v1231_v4  ;;  %v2074_v4 = vld [vmem:[%s3073_s7 + $0x50] sm:$0xff] }
 0xa63   : > { %v2204_v5 = vpop.eup %2203 }
 0xa64   : > { %v1233_v11 = vsel %vm758_vm7, %v2204_v5, 0.0 }
 0xa65   : > { %1234 = vadd.xlane.f32.xlu0 %v1233_v11  ;;  %v2072_v11 = vld [vmem:[%s3073_s7 + $0x40] sm:$0xff] }
 0xa6b   : > { %v1297_v52 = vpop.permute.xlu0 %1296 }
 0xa6c   : > { %v1302_v6 = vsel %vm775_vm5, %v1297_v52, 0  ;;  %v2182_v52 = vld [vmem:[%s3118_s18 + $0x1] ss:$0 sm:$0xff]  ;;  %vm1599_vm5 = vcmask 1040384  }
 0xa6d   : > { %1311 = vmatpush.bf16.msrb.mxu3 %v1302_v6 }
 0xaba   : > { %v1291_v7 = vpop.xlane.xlu2 %1290 }
 0xabb   : > { %2205 = vrcp.f32 %v1291_v7 }
 0xac1   : > { %v2206_v9 = vpop.eup %2205 }
 0xac2   : > { %v1293_v10 = vmul.f32 %v2206_v9, %v2202_v0  ;;  %v2078_v0 = vld [vmem:[%s3073_s7 + $0x70] sm:$0xff] }
 0xac4   : > { %v1294_v12 = vpack.c.bf16 %v1293_v10, %v1293_v10 }
 0xac6   : > { %1945 = vmatmul.msk.bf16.vlgmr.msrb.gmra.mxu3 %vm758_vm7, %v1294_v12 }
 0xad8   : > { %v1235_v14 = vpop.xlane.xlu0 %1234 }
 0xad9   : > { %2207 = vrcp.f32 %v1235_v14 }
 0xadf   : > { %v2208_v15 = vpop.eup %2207 }
 0xae0   : > { %v1237_v16 = vmul.f32 %v2208_v15, %v2204_v5  ;;  %v2073_v5 = vld [vmem:[%s3073_s7 + $0x48] sm:$0xff] }
 0xae2   : > { %v1238_v17 = vpack.c.bf16 %v1237_v16, %v1237_v16 }
 0xae4   : > { %1943 = vmatmul.msk.bf16.vlgmr.msra.gmra.mxu0 %vm758_vm7, %v1238_v17 }
 0xb49   : > { %v1313_v21 = vpop.f32.mrf.mxu3 }
 0xb4a   : > { %v1317_v22 = vpack.c.bf16 %v1313_v21, %v1313_v21  ;;  %v1457_v21 = vperm.slane %v2969_v29, 3 }
 0xb4c   : > { %1954 = vmatmul.msk.bf16.vlgmr.msrb.gmra.mxu2 %vm738_vm6, %v1317_v22 }
 0xb51   : > { %v1315_v23 = vpop.f32.mrf.mxu3 }
 0xb61   : > { %v1255_v24 = vpop.f32.mrf.mxu0 }
 0xb62   : > { %v1259_v25 = vpack.c.bf16 %v1255_v24, %v1255_v24 }
 0xb64   : > { %1963 = vmatmul.msk.bf16.vlgmr.msrb.gmra.mxu0 %vm738_vm6, %v1259_v25 }
 0xb69   : > { %v1257_v26 = vpop.f32.mrf.mxu0 }
 0xbcf   : > { %v1342_v27 = vpop.f32.mrf.mxu2 }
 0xbd7   : > { %v1344_v28 = vpop.f32.mrf.mxu2 }
 0xbe1   : > { %v1370_v31 = vpop.f32.mrf.mxu0 }
 0xbe2   : > { %v1371_v32 = vadd.f32 %v1370_v31, %v1342_v27 }
 0xbe4   : > { %v1375_v34 = vadd.f32 %v1374_v30, %v1371_v32 }
 0xbe6   : > { %v1376_v35 = vadd.f32 %v1375_v34, %v2928_v33  ;;  %v2079_v33 = vld [vmem:[%s3073_s7 + $0x78] sm:$0xff] }
 0xbe7   : > { %1506 = vmatpush.bf16.msra.mxu3 %v2079_v33  ;;  %v2083_v34 = vld [vmem:[%s3119_s21 + $0x18] sm:$0xff]  ;;  %v1542_v33 = vperm.slane %v2969_v29, 4 }
 0xbe8   : > { %v1377_v36 = vsel %vm576_vm0, %v1376_v35, 0.0  ;;  %1590 = vmatpush.bf16.msra.mxu2 %v2083_v34 }
 0xbe9   : > { %v1372_v37 = vpop.f32.mrf.mxu0  ;;  %1378 = vadd.xlane.f32.xlu1 %v1377_v36  ;;  %v2081_v36 = vld [vmem:[%s3119_s21 + $0x8] sm:$0xff] }
 0xbea   : > { %v2080_v37 = vld [vmem:[%s3119_s21] sm:$0xff] }
 0xbeb   : > { %1507 = vmatpush.bf16.msra.mxu3 %v2078_v0 }
 0xbef   : > { %1508 = vmatpush.bf16.msra.mxu3 %v2077_v1 }
 0xbf3   : > { %1509 = vmatpush.bf16.msra.mxu3 %v2076_v2 }
 0xbf7   : > { %1510 = vmatpush.bf16.msra.mxu3 %v2075_v3 }
 0xbfb   : > { %1511 = vmatpush.bf16.msra.mxu3 %v2074_v4 }
 0xbff   : > { %1512 = vmatpush.bf16.msra.mxu3 %v2073_v5 }
 0xc03   : > { %1513 = vmatpush.bf16.msra.mxu3 %v2072_v11 }
 0xc5c   : > { %v1379_v38 = vpop.xlane.xlu1 %1378 }
 0xc5d   : > { %v1380_v39 = vmul.f32 %v1379_v38, %v2737_v8 }
 0xc5f   : > { %v1381_v40 = vsub.f32 %v1376_v35, %v1380_v39  ;;  %v2082_v35 = vld [vmem:[%s3119_s21 + $0x10] sm:$0xff] }
 0xc60   : > { %1591 = vmatpush.bf16.msra.mxu2 %v2082_v35 }
 0xc61   : > { %v1382_v41 = vmul.f32 %v1381_v40, %v1381_v40 }
 0xc63   : > { %v1383_v42 = vsel %vm576_vm0, %v1382_v41, 0.0 }
 0xc64   : > { %1384 = vadd.xlane.f32.xlu2 %v1383_v42  ;;  %1592 = vmatpush.bf16.msra.mxu2 %v2081_v36 }
 0xc68   : > { %1593 = vmatpush.bf16.msra.mxu2 %v2080_v37 }
 0xcd7   : > { %v1385_v46 = vpop.xlane.xlu2 %1384 }
 0xcd8   : > { %v1386_v47 = vmul.f32 %v1385_v46, %v2737_v8 }
 0xcda   : > { %v1387_v48 = vadd.f32 1e-12, %v1386_v47  ;;  %v1544_v47 = vperm.slane %v2969_v29, 5 }
 0xcdc   : > { %2209 = vrsqrt.f32 %v1387_v48  ;;  %vm1394_vm15 = vweird.f32 %v1387_v48 }
 0xce2   : > { %v2210_v49 = vpop.eup %2209 }
 0xce3   : > { %v1389_v50 = vmul.f32 %v2210_v49, %v1387_v48  ;;  %vm1395_vm14 = vweird.f32 %v2210_v49 }
 0xce4   : > { %vm1396_vm1 = vmor %vm1394_vm15, %vm1395_vm14 }
 0xce5   : > { %v1390_v51 = vmul.f32 %v2210_v49, %v1389_v50 }
 0xce7   : > { %v1391_v54 = vmul.f32 0.5, %v1390_v51 }
 0xce9   : > { %v1392_v55 = vsub.f32 1.5, %v1391_v54 }
 0xceb   : > { %v1393_v56 = vmul.f32 %v2210_v49, %v1392_v55 }
 0xced   : > { %v1397_v58 = vsel %vm1396_vm1, %v2210_v49, %v1393_v56  ;;  %v1558_v56 = vld [vmem:[%s3120_s23] sm:$0x1] }
 0xcee   : > { %v1398_v60 = vmul.f32 %v1397_v58, %v1381_v40 }
 0xcf0   : > { %v1400_v61 = vmul.f32 %v1399_v57, %v1398_v60 }
 0xcf2   : > { %v1402_v62 = vadd.f32 %v1401_v59, %v1400_v61 }
 0xcf4   : > { %v1403_v63 = vpack.c.bf16 %v1402_v62, %v1402_v62 }
 0xcf6   : > { %1980 = vmatmul.msk.bf16.vlgmr.msra.gmra.mxu1 %vm576_vm0, %v1403_v63 }
 0xd73   : > { %v1443_v6 = vpop.f32.mrf.mxu1 }
 0xd74   : > { %v1444_v7 = vadd.f32 %v2182_v52, %v1443_v6 }
 0xd76   : > { %v1447_v9 = vmul.f32 %v1444_v7, %v1444_v7 }
 0xd78   : > { %v1448_v10 = vmul.f32 %v1447_v9, %v1444_v7 }
 0xd7a   : > { %v1449_v12 = vmul.f32 0.044715, %v1448_v10 }
 0xd7b   : > { %v1445_v13 = vpop.f32.mrf.mxu1 }
 0xd7c   : > { %v1450_v14 = vadd.f32 %v1449_v12, %v1444_v7 }
 0xd7e   : > { %v1451_v15 = vmul.f32 0.7978846, %v1450_v14 }
 0xd80   : > { %2211 = vtanh.f32 %v1451_v15 }
 0xd86   : > { %v2212_v16 = vpop.eup %2211 }
 0xd87   : > { %v1453_v17 = vadd.f32 1.0, %v2212_v16 }
 0xd89   : > { %v1454_v18 = vmul.f32 0.5, %v1453_v17 }
 0xd8b   : > { %v1455_v19 = vmul.f32 %v1454_v18, %v1444_v7 }
 0xd8d   : > { %v1456_v20 = vpack.c.bf16 %v1455_v19, %v1455_v19 }
 0xd8f   : > { %1514 = vmatmul.bf16.vlgmr.msra.gmra.mxu3 %v1456_v20 }
 0xe12   : > { %v1515_v22 = vpop.f32.mrf.mxu3 }
 0xe13   : > { %v1516_v23 = vadd.f32 %v1515_v22, %v1457_v21 }
 0xe15   : > { %v1519_v24 = vadd.f32 %v1516_v23, %v1402_v62 }
 0xe17   : > { %v1520_v25 = vsel %vm576_vm0, %v1519_v24, 0.0 }
 0xe18   : > { %1521 = vadd.xlane.f32.xlu1 %v1520_v25 }
 0xe1a   : > { %v1517_v26 = vpop.f32.mrf.mxu3 }
 0xe8b   : > { %v1522_v27 = vpop.xlane.xlu1 %1521 }
 0xe8c   : > { %v1523_v28 = vmul.f32 %v1522_v27, %v2737_v8 }
 0xe8e   : > { %v1524_v30 = vsub.f32 %v1519_v24, %v1523_v28 }
 0xe90   : > { %v1525_v31 = vmul.f32 %v1524_v30, %v1524_v30 }
 0xe92   : > { %v1526_v32 = vsel %vm576_vm0, %v1525_v31, 0.0 }
 0xe93   : > { %1527 = vadd.xlane.f32.xlu2 %v1526_v32 }
 0xf06   : > { %v1528_v38 = vpop.xlane.xlu2 %1527 }
 0xf07   : > { %v1529_v39 = vmul.f32 %v1528_v38, %v2737_v8  ;;  %v1546_v8 = vld [vmem:[%s506_s15] sm:$0x1] }
 0xf09   : > { %v1530_v40 = vadd.f32 1e-12, %v1529_v39 }
 0xf0b   : > { %2213 = vrsqrt.f32 %v1530_v40  ;;  %vm1537_vm3 = vweird.f32 %v1530_v40 }
 0xf11   : > { %v2214_v41 = vpop.eup %2213 }
 0xf12   : > { %v1532_v42 = vmul.f32 %v2214_v41, %v1530_v40  ;;  %vm1538_vm2 = vweird.f32 %v2214_v41 }
 0xf13   : > { %vm1539_vm4 = vmor %vm1537_vm3, %vm1538_vm2 }
 0xf14   : > { %v1533_v53 = vmul.f32 %v2214_v41, %v1532_v42 }
 0xf16   : > { %v1534_v43 = vmul.f32 0.5, %v1533_v53 }
 0xf18   : > { %v1535_v44 = vsub.f32 1.5, %v1534_v43 }
 0xf1a   : > { %v1536_v45 = vmul.f32 %v2214_v41, %v1535_v44 }
 0xf1c   : > { %v1540_v46 = vsel %vm1539_vm4, %v2214_v41, %v1536_v45 }
 0xf1d   : > { %v1541_v48 = vmul.f32 %v1540_v46, %v1524_v30 }
 0xf1f   : > { %v1543_v49 = vmul.f32 %v1542_v33, %v1541_v48 }
 0xf21   : > { %v1545_v50 = vadd.f32 %v1544_v47, %v1543_v49 }
 0xf23   : > { %v1547_v51 = vmul.f32 %v1546_v8, %v1545_v50 }
 0xf25   : > { %v1548_v54 = vmax.f32 %v1547_v51, 0.0 }
 0xf27   : > { %v1549_v55 = vpack.c.bf16 %v1548_v54, %v1548_v54 }
 0xf29   : > { %2029 = vmatmul.msk.bf16.vlgmr.msra.gmra.mxu2 %vm576_vm0, %v1549_v55 }
 0xfac   : > { %v1595_v57 = vpop.f32.mrf.mxu2 }
 0xfad   : > { %v1596_v58 = vadd.f32 %v1595_v57, %v1558_v56 }
 0xfaf   : > { %v1600_v29 = vsel %vm1599_vm5, %v1596_v58, -inf }
 0xfb0   : > { %1601 = vmax.xlane.f32.xlu1 %v1600_v29 }
 0xfb4   : > { %v1597_v59 = vpop.f32.mrf.mxu2 }
0x1023   : > { %v1602_v60 = vpop.xlane.xlu1 %1601 }
0x1024   : > { %v1603_v61 = vsub.f32 %v1596_v58, %v1602_v60 }
0x1026   : > { %v1604_v62 = vmul.f32 1.442695, %v1603_v61 }
0x1028   : > { %2215 = vpow2.f32 %v1604_v62 }
0x102e   : > { %v2216_v63 = vpop.eup %2215 }
0x102f   : > { %v1606_v0 = vsel %vm1599_vm5, %v2216_v63, 0.0 }
0x1030   : > { %1607 = vadd.xlane.f32.xlu2 %v1606_v0 }
0x10a3   : > { %v1608_v1 = vpop.xlane.xlu2 %1607 }
0x10a4   : > { %2217 = vlog2.f32 %v1608_v1 }
0x10aa   : > { %v2218_v2 = vpop.eup %2217 }
0x10ab   : > { %v1610_v3 = vmul.f32 0.6931472, %v2218_v2 }
0x10ad   : > { %v1611_v4 = vsub.f32 %v1603_v61, %v1610_v3 }
0x10af   : > { %1612 = vst [vmem:[%s571_s3] sm:$0x1] %v1611_v4 }
0x10b0   : > { %2426 = shalt.err (!%p2423_p13)
}
0x10b1   : > { %2102 = dma.vmem_to_hbm [thread:$0]  (%p2633_p7), %s1625_s17, 16, %s1627_s27, %s1614_s11  }
0x10b2 PF: > { %s3123_s20 = sld [smem:[#allocation19_spill]]  ;;  %p3125_p0 = scmp.ge.s32.totalorder %s2477_s28, 2 }
0x10b4   : > { %p2125_p8 = pnand %p3125_p0, %p2595_p6 }
0x10b6   : > { %p2126_p10 = pneg %p2125_p8 }
0x10b8   : > { %s1638_s13 = sand.u32 1, %s3123_s20  }
0x10b9   : > { %s1639_s23 = scalar_lea.sflag [#allocation4], %s1638_s13 }
0x10ba   : > { %2460 = dma.done.wait (%p2126_p10), %s1639_s23, 16  }
0x10bb   : > { %2462 = vsyncadd (%p2126_p10), %s1639_s23, 4294967280  ;;  %s3126_s28 = sld [smem:[#allocation22_spill]]  ;;  %s3129_s25 = smov %s2469_s26 }
0x10bc   : > { %s3127_s15 = sld [smem:[#allocation20_spill]] }
0x10bd   : > { %s3128_s27 = sld [smem:[#allocation23_spill]] }
0x10c1   : > { %p31_p12 = scmp.ge.s32.totalorder %s3126_s28, 4  }
0x10c2   : > { %s3130_s26 = smov %s3127_s15 }
0x10c3   :  { %33 = sbr.rel (!%p31_p12) target bundleno = 17 (0x11), region = 160 }
0x10c8   :  { %1644 = vsyncpa [#allocation3], 1 }
0x10c9   :  { %1646 = vsyncpa [#allocation3 + $0x1], 1 }
0x10ca   :  { %1647 = vsyncpa [#allocation6], 1 }
0x10cb   :  { %1649 = vsyncpa [#allocation6 + $0x1], 1 }
0x10cc   :  { %1650 = vsyncpa [#allocation9], 1 }
0x10cd   :  { %1651 = vsyncpa [#allocation12], 1 }
0x10ce   :  { %1652 = vsyncpa [#allocation4], 1 }
0x10cf   :  { %1654 = vsyncpa [#allocation4 + $0x1], 1 }

</bundles_post_ra>
